<compile_context>
chip_gen: v6e
topology: v6e:2x2x1
jax: 0.10.0
libtpu: 0.0.40
codegen_flags: <defaults>
</compile_context>

<pallas_src>
import functools
import math

import jax
import jax.numpy as jnp
from jax.experimental import pallas as pl
from jax.experimental.pallas import tpu as pltpu


# ------------------------------ fused kernel -------------------------------

def _fused_forward_kernel(
    src_ref, pe_ref, in_w_ref, in_b_ref,
    qkv_w_ref, qkv_b_ref, out_w_ref, out_b_ref,
    ln1_g_ref, ln1_b_ref, ff1_w_ref, ff1_b_ref, ff2_w_ref, ff2_b_ref,
    ln2_g_ref, ln2_b_ref, h1_w_ref, h1_b_ref, h2_w_ref, h2_b_ref,
    o_ref, *, num_layers, nhead, eps):
    S = src_ref.shape[1]
    D = in_w_ref.shape[1]
    hd = D // nhead
    in_scale = math.sqrt(D)
    attn_scale = 1.0 / math.sqrt(hd)

    def mm(x, w):
        # bf16 MXU matmul, f32 accumulation.
        return jnp.dot(x.astype(jnp.bfloat16), w.astype(jnp.bfloat16),
                       preferred_element_type=jnp.float32)

    def add_ln(x, r, g, b):
        # fused residual add + LayerNorm over last dim, all f32.
        h = x + r
        mean = jnp.mean(h, axis=-1, keepdims=True)
        var = jnp.mean(jnp.square(h - mean), axis=-1, keepdims=True)
        return (h - mean) * jax.lax.rsqrt(var + eps) * g + b

    # input projection, *sqrt(d_model), +positional encoding (fused epilogue)
    x = mm(src_ref[0], in_w_ref[...]) + in_b_ref[...]            # (S, D) f32
    x = x * in_scale + pe_ref[...]

    for l in range(num_layers):                                  # static unroll
        # ---- multi-head self-attention (head split via lane slicing) ----
        qkv = mm(x, qkv_w_ref[l]) + qkv_b_ref[l]                 # (S, 3D)
        heads = []
        for h in range(nhead):
            q = qkv[:, h * hd:(h + 1) * hd]
            k = qkv[:, D + h * hd:D + (h + 1) * hd]
            v = qkv[:, 2 * D + h * hd:2 * D + (h + 1) * hd]
            s = jnp.einsum("qd,kd->qk",
                           q.astype(jnp.bfloat16), k.astype(jnp.bfloat16),
                           preferred_element_type=jnp.float32) * attn_scale
            m = jnp.max(s, axis=-1, keepdims=True)
            p = jnp.exp(s - m)
            p = p * pl.reciprocal(jnp.sum(p, axis=-1, keepdims=True), approx=True)
            heads.append(jnp.dot(p.astype(jnp.bfloat16), v.astype(jnp.bfloat16),
                                 preferred_element_type=jnp.float32))
        attn = jnp.concatenate(heads, axis=-1)                   # (S, D)
        attn = mm(attn, out_w_ref[l]) + out_b_ref[l]
        x = add_ln(x, attn, ln1_g_ref[l], ln1_b_ref[l])
        # ---- feed-forward ----
        ff = jnp.maximum(mm(x, ff1_w_ref[l]) + ff1_b_ref[l], 0.0)
        ff = mm(ff, ff2_w_ref[l]) + ff2_b_ref[l]
        x = add_ln(x, ff, ln2_g_ref[l], ln2_b_ref[l])

    # ---- output head on the last time step ----
    last = x[S - 1:S, :]                                         # (1, D)
    h1 = jnp.maximum(mm(last, h1_w_ref[...]) + h1_b_ref[...], 0.0)
    out = mm(h1, h2_w_ref[...]) + h2_b_ref[...]                  # (1, out_dim)
    o_ref[...] = out.reshape(o_ref.shape).astype(o_ref.dtype)


# ------------------------------ glue / params ------------------------------

def positional_encoding(seq_len, d_model):
    position = jnp.arange(seq_len, dtype=jnp.float32)[:, None]
    div_term = jnp.exp(
        jnp.arange(0, d_model, 2, dtype=jnp.float32) * (-math.log(10000.0) / d_model)
    )
    pe = jnp.zeros((seq_len, d_model), jnp.float32)
    pe = pe.at[:, 0::2].set(jnp.sin(position * div_term))
    pe = pe.at[:, 1::2].set(jnp.cos(position * div_term))
    return pe


def init_params(key, input_dim, d_model, nhead, num_layers, dim_ff, output_dim):
    keys = iter(jax.random.split(key, 3 + 4 * num_layers))

    def xavier(fan_in, fan_out, shape):
        limit = math.sqrt(6.0 / (fan_in + fan_out))
        w = jax.random.uniform(next(keys), shape, jnp.float32, -limit, limit)
        return w.astype(jnp.bfloat16)   # bf16 matmul operands (f32 accumulate in-kernel)

    qkv_w = [xavier(d_model, 3 * d_model, (d_model, 3 * d_model)) for _ in range(num_layers)]
    out_w = [xavier(d_model, d_model, (d_model, d_model)) for _ in range(num_layers)]
    ff1_w = [xavier(d_model, dim_ff, (d_model, dim_ff)) for _ in range(num_layers)]
    ff2_w = [xavier(dim_ff, d_model, (dim_ff, d_model)) for _ in range(num_layers)]

    L = num_layers
    zeros = lambda *s: jnp.zeros(s, jnp.float32)
    ones = lambda *s: jnp.ones(s, jnp.float32)
    return {
        "in_w": xavier(input_dim, d_model, (input_dim, d_model)),
        "in_b": zeros(1, d_model),
        "qkv_w": jnp.stack(qkv_w), "qkv_b": zeros(L, 1, 3 * d_model),
        "out_w": jnp.stack(out_w), "out_b": zeros(L, 1, d_model),
        "ln1_g": ones(L, 1, d_model), "ln1_b": zeros(L, 1, d_model),
        "ff1_w": jnp.stack(ff1_w), "ff1_b": zeros(L, 1, dim_ff),
        "ff2_w": jnp.stack(ff2_w), "ff2_b": zeros(L, 1, d_model),
        "ln2_g": ones(L, 1, d_model), "ln2_b": zeros(L, 1, d_model),
        "h1_w": xavier(d_model, dim_ff, (d_model, dim_ff)),
        "h1_b": zeros(1, dim_ff),
        "h2_w": xavier(dim_ff, output_dim, (dim_ff, output_dim)),
        "h2_b": zeros(1, output_dim),
    }


def time_series_transformer(src, params, *, nhead):
    B, S, Fin = src.shape
    D = params["in_w"].shape[1]
    F = params["h1_w"].shape[1]
    out_dim = params["h2_w"].shape[1]
    L = int(params["qkv_w"].shape[0])
    assert D % nhead == 0 and D % 2 == 0

    pe = positional_encoding(S, D)

    inputs = (src, pe, params["in_w"], params["in_b"],
              params["qkv_w"], params["qkv_b"], params["out_w"], params["out_b"],
              params["ln1_g"], params["ln1_b"],
              params["ff1_w"], params["ff1_b"], params["ff2_w"], params["ff2_b"],
              params["ln2_g"], params["ln2_b"],
              params["h1_w"], params["h1_b"], params["h2_w"], params["h2_b"])

    def whole(a):  # whole-array VMEM-resident block (weights / PE), reused across grid steps
        return pl.BlockSpec(a.shape, lambda b, _n=a.ndim: (0,) * _n)

    in_specs = [pl.BlockSpec((1, S, Fin), lambda b: (b, 0, 0))]
    in_specs += [whole(a) for a in inputs[1:]]

    flops = 2 * B * (S * Fin * D
                     + L * S * (3 * D * D + D * D + 2 * S * D + 2 * D * F)
                     + D * F + F * out_dim)
    bytes_accessed = sum(int(a.size) * a.dtype.itemsize for a in inputs) + B * out_dim * 4
    transcendentals = B * L * nhead * S * S

    out = pl.pallas_call(
        functools.partial(_fused_forward_kernel, num_layers=L, nhead=nhead, eps=1e-5),
        out_shape=jax.ShapeDtypeStruct((B, 1, out_dim), jnp.float32),
        grid=(B,),
        in_specs=in_specs,
        out_specs=pl.BlockSpec((1, 1, out_dim), lambda b: (b, 0, 0)),
        compiler_params=pltpu.CompilerParams(
            dimension_semantics=("parallel",),          # v7x: shard batch across 2 TCs
            vmem_limit_bytes=32 * 1024 * 1024,
        ),
        cost_estimate=pl.CostEstimate(
            flops=int(flops),
            transcendentals=int(transcendentals),
            bytes_accessed=int(bytes_accessed)),
    )(*inputs)
    return out.reshape(B, out_dim)


if __name__ == "__main__":
    B, S = 2, 8
    input_dim, d_model, nhead = 4, 32, 4
    num_layers, dim_ff, output_dim = 2, 64, 1

    key = jax.random.PRNGKey(0)
    k_param, k_data = jax.random.split(key)
    params = init_params(k_param, input_dim, d_model, nhead, num_layers, dim_ff, output_dim)
    src = jax.random.normal(k_data, (B, S, input_dim), dtype=jnp.float32)

    fwd = jax.jit(functools.partial(time_series_transformer, nhead=nhead))
    out = jax.block_until_ready(fwd(src, params))
    assert out.shape == (B, output_dim), out.shape
    assert bool(jnp.all(jnp.isfinite(out)))
    print("KERNEL_OK")
</pallas_src>

<mosaic_0001>
module attributes {stable_mosaic.version = 11 : i64} {
  func.func @_fused_forward_kernel(%arg0: i32, %arg1: memref<1x8x4xf32, #tpu.memory_space<vmem>>, %arg2: memref<8x32xf32, #tpu.memory_space<vmem>>, %arg3: memref<4x32xbf16, #tpu.memory_space<vmem>>, %arg4: memref<1x32xf32, #tpu.memory_space<vmem>>, %arg5: memref<2x32x96xbf16, #tpu.memory_space<vmem>>, %arg6: memref<2x1x96xf32, #tpu.memory_space<vmem>>, %arg7: memref<2x32x32xbf16, #tpu.memory_space<vmem>>, %arg8: memref<2x1x32xf32, #tpu.memory_space<vmem>>, %arg9: memref<2x1x32xf32, #tpu.memory_space<vmem>>, %arg10: memref<2x1x32xf32, #tpu.memory_space<vmem>>, %arg11: memref<2x32x64xbf16, #tpu.memory_space<vmem>>, %arg12: memref<2x1x64xf32, #tpu.memory_space<vmem>>, %arg13: memref<2x64x32xbf16, #tpu.memory_space<vmem>>, %arg14: memref<2x1x32xf32, #tpu.memory_space<vmem>>, %arg15: memref<2x1x32xf32, #tpu.memory_space<vmem>>, %arg16: memref<2x1x32xf32, #tpu.memory_space<vmem>>, %arg17: memref<32x64xbf16, #tpu.memory_space<vmem>>, %arg18: memref<1x64xf32, #tpu.memory_space<vmem>>, %arg19: memref<64x1xbf16, #tpu.memory_space<vmem>>, %arg20: memref<1x1xf32, #tpu.memory_space<vmem>>, %arg21: memref<1x1x1xf32, #tpu.memory_space<vmem>>) attributes {dimension_semantics = [#tpu.dimension_semantics<parallel>], iteration_bounds = array<i64: 2>, scalar_prefetch = 0 : i64, scratch_operands = 0 : i64, tpu.core_type = #tpu.core_type<tc>, window_params = [{transform_indices = @transform_0, window_bounds = array<i64: 1, 8, 4>}, {pipeline_mode = #tpu.pipeline_mode<synchronous>, transform_indices = @transform_1, window_bounds = array<i64: 8, 32>}, {pipeline_mode = #tpu.pipeline_mode<synchronous>, transform_indices = @transform_2, window_bounds = array<i64: 4, 32>}, {pipeline_mode = #tpu.pipeline_mode<synchronous>, transform_indices = @transform_3, window_bounds = array<i64: 1, 32>}, {pipeline_mode = #tpu.pipeline_mode<synchronous>, transform_indices = @transform_4, window_bounds = array<i64: 2, 32, 96>}, {pipeline_mode = #tpu.pipeline_mode<synchronous>, transform_indices = @transform_5, window_bounds = array<i64: 2, 1, 96>}, {pipeline_mode = #tpu.pipeline_mode<synchronous>, transform_indices = @transform_6, window_bounds = array<i64: 2, 32, 32>}, {pipeline_mode = #tpu.pipeline_mode<synchronous>, transform_indices = @transform_7, window_bounds = array<i64: 2, 1, 32>}, {pipeline_mode = #tpu.pipeline_mode<synchronous>, transform_indices = @transform_8, window_bounds = array<i64: 2, 1, 32>}, {pipeline_mode = #tpu.pipeline_mode<synchronous>, transform_indices = @transform_9, window_bounds = array<i64: 2, 1, 32>}, {pipeline_mode = #tpu.pipeline_mode<synchronous>, transform_indices = @transform_10, window_bounds = array<i64: 2, 32, 64>}, {pipeline_mode = #tpu.pipeline_mode<synchronous>, transform_indices = @transform_11, window_bounds = array<i64: 2, 1, 64>}, {pipeline_mode = #tpu.pipeline_mode<synchronous>, transform_indices = @transform_12, window_bounds = array<i64: 2, 64, 32>}, {pipeline_mode = #tpu.pipeline_mode<synchronous>, transform_indices = @transform_13, window_bounds = array<i64: 2, 1, 32>}, {pipeline_mode = #tpu.pipeline_mode<synchronous>, transform_indices = @transform_14, window_bounds = array<i64: 2, 1, 32>}, {pipeline_mode = #tpu.pipeline_mode<synchronous>, transform_indices = @transform_15, window_bounds = array<i64: 2, 1, 32>}, {pipeline_mode = #tpu.pipeline_mode<synchronous>, transform_indices = @transform_16, window_bounds = array<i64: 32, 64>}, {pipeline_mode = #tpu.pipeline_mode<synchronous>, transform_indices = @transform_17, window_bounds = array<i64: 1, 64>}, {pipeline_mode = #tpu.pipeline_mode<synchronous>, transform_indices = @transform_18, window_bounds = array<i64: 64, 1>}, {pipeline_mode = #tpu.pipeline_mode<synchronous>, transform_indices = @transform_19, window_bounds = array<i64: 1, 1>}, {transform_indices = @transform_20, window_bounds = array<i64: 1, 1, 1>}]} {
    %c0 = arith.constant 0 : index
    %c0_0 = arith.constant 0 : index
    %c0_1 = arith.constant 0 : index
    %0 = vector.load %arg1[%c0, %c0_0, %c0_1] : memref<1x8x4xf32, #tpu.memory_space<vmem>>, vector<1x8x4xf32>
    %1 = vector.shape_cast %0 : vector<1x8x4xf32> to vector<8x4xf32>
    %c0_2 = arith.constant 0 : index
    %c0_3 = arith.constant 0 : index
    %2 = vector.load %arg3[%c0_2, %c0_3] : memref<4x32xbf16, #tpu.memory_space<vmem>>, vector<4x32xbf16>
    %3 = arith.truncf %1 : vector<8x4xf32> to vector<8x4xbf16>
    %cst = arith.constant dense<0.000000e+00> : vector<8x32xf32>
    %4 = tpu.matmul %3, %2, %cst {dimension_numbers = #tpu.dot_dimension_numbers<[1], [0], [0], [1], [0, 0, 1, 1], [], []>} : vector<8x4xbf16>, vector<4x32xbf16>, vector<8x32xf32> -> vector<8x32xf32>
    %c0_4 = arith.constant 0 : index
    %c0_5 = arith.constant 0 : index
    %5 = vector.load %arg4[%c0_4, %c0_5] : memref<1x32xf32, #tpu.memory_space<vmem>>, vector<1x32xf32>
    %6 = vector.broadcast %5 : vector<1x32xf32> to vector<8x32xf32>
    %7 = arith.addf %4, %6 : vector<8x32xf32>
    %cst_6 = arith.constant 5.65685415 : f32
    %8 = vector.broadcast %cst_6 : f32 to vector<8x32xf32>
    %9 = arith.mulf %7, %8 : vector<8x32xf32>
    %c0_7 = arith.constant 0 : index
    %c0_8 = arith.constant 0 : index
    %10 = vector.load %arg2[%c0_7, %c0_8] : memref<8x32xf32, #tpu.memory_space<vmem>>, vector<8x32xf32>
    %11 = arith.addf %9, %10 : vector<8x32xf32>
    %c0_9 = arith.constant 0 : index
    %c0_10 = arith.constant 0 : index
    %c0_11 = arith.constant 0 : index
    %12 = vector.load %arg5[%c0_9, %c0_10, %c0_11] : memref<2x32x96xbf16, #tpu.memory_space<vmem>>, vector<1x32x96xbf16>
    %13 = vector.shape_cast %12 : vector<1x32x96xbf16> to vector<32x96xbf16>
    %14 = arith.truncf %11 : vector<8x32xf32> to vector<8x32xbf16>
    %cst_12 = arith.constant dense<0.000000e+00> : vector<8x96xf32>
    %15 = tpu.matmul %14, %13, %cst_12 {dimension_numbers = #tpu.dot_dimension_numbers<[1], [0], [0], [1], [0, 0, 1, 1], [], []>} : vector<8x32xbf16>, vector<32x96xbf16>, vector<8x96xf32> -> vector<8x96xf32>
    %c0_13 = arith.constant 0 : index
    %c0_14 = arith.constant 0 : index
    %c0_15 = arith.constant 0 : index
    %16 = vector.load %arg6[%c0_13, %c0_14, %c0_15] : memref<2x1x96xf32, #tpu.memory_space<vmem>>, vector<1x1x96xf32>
    %17 = vector.shape_cast %16 : vector<1x1x96xf32> to vector<1x96xf32>
    %18 = vector.broadcast %17 : vector<1x96xf32> to vector<8x96xf32>
    %19 = arith.addf %15, %18 : vector<8x96xf32>
    %20 = vector.extract_strided_slice %19 {offsets = [0, 0], sizes = [8, 8], strides = [1, 1]} : vector<8x96xf32> to vector<8x8xf32>
    %21 = vector.extract_strided_slice %19 {offsets = [0, 32], sizes = [8, 8], strides = [1, 1]} : vector<8x96xf32> to vector<8x8xf32>
    %22 = vector.extract_strided_slice %19 {offsets = [0, 64], sizes = [8, 8], strides = [1, 1]} : vector<8x96xf32> to vector<8x8xf32>
    %23 = arith.truncf %20 : vector<8x8xf32> to vector<8x8xbf16>
    %24 = arith.truncf %21 : vector<8x8xf32> to vector<8x8xbf16>
    "tpu.trace_start"() <{level = 10 : i32, message = "qd,kd->qk"}> : () -> ()
    %cst_16 = arith.constant dense<0.000000e+00> : vector<8x8xf32>
    %25 = tpu.matmul %23, %24, %cst_16 {dimension_numbers = #tpu.dot_dimension_numbers<[1], [1], [0], [0], [0, 0, 1, 0], [], []>} : vector<8x8xbf16>, vector<8x8xbf16>, vector<8x8xf32> -> vector<8x8xf32>
    "tpu.trace_stop"() : () -> ()
    %cst_17 = arith.constant 0.353553385 : f32
    %26 = vector.broadcast %cst_17 : f32 to vector<8x8xf32>
    %27 = arith.mulf %25, %26 : vector<8x8xf32>
    %cst_18 = arith.constant dense<0xFF800000> : vector<8xf32>
    %28 = vector.multi_reduction <maximumf>, %27, %cst_18 [1] : vector<8x8xf32> to vector<8xf32>
    %29 = vector.shape_cast %28 : vector<8xf32> to vector<8x1xf32>
    %30 = vector.broadcast %29 : vector<8x1xf32> to vector<8x8xf32>
    %31 = arith.subf %27, %30 : vector<8x8xf32>
    %32 = math.exp %31 : vector<8x8xf32>
    %cst_19 = arith.constant dense<0.000000e+00> : vector<8xf32>
    %33 = vector.multi_reduction <add>, %32, %cst_19 [1] : vector<8x8xf32> to vector<8xf32>
    %34 = vector.shape_cast %33 : vector<8xf32> to vector<8x1xf32>
    %35 = tpu.reciprocal %34 {approx = true} : vector<8x1xf32> -> vector<8x1xf32>
    %36 = vector.broadcast %35 : vector<8x1xf32> to vector<8x8xf32>
    %37 = arith.mulf %32, %36 : vector<8x8xf32>
    %38 = arith.truncf %37 : vector<8x8xf32> to vector<8x8xbf16>
    %39 = arith.truncf %22 : vector<8x8xf32> to vector<8x8xbf16>
    %cst_20 = arith.constant dense<0.000000e+00> : vector<8x8xf32>
    %40 = tpu.matmul %38, %39, %cst_20 {dimension_numbers = #tpu.dot_dimension_numbers<[1], [0], [0], [1], [0, 0, 1, 1], [], []>} : vector<8x8xbf16>, vector<8x8xbf16>, vector<8x8xf32> -> vector<8x8xf32>
    %41 = vector.extract_strided_slice %19 {offsets = [0, 8], sizes = [8, 8], strides = [1, 1]} : vector<8x96xf32> to vector<8x8xf32>
    %42 = vector.extract_strided_slice %19 {offsets = [0, 40], sizes = [8, 8], strides = [1, 1]} : vector<8x96xf32> to vector<8x8xf32>
    %43 = vector.extract_strided_slice %19 {offsets = [0, 72], sizes = [8, 8], strides = [1, 1]} : vector<8x96xf32> to vector<8x8xf32>
    %44 = arith.truncf %41 : vector<8x8xf32> to vector<8x8xbf16>
    %45 = arith.truncf %42 : vector<8x8xf32> to vector<8x8xbf16>
    "tpu.trace_start"() <{level = 10 : i32, message = "qd,kd->qk"}> : () -> ()
    %cst_21 = arith.constant dense<0.000000e+00> : vector<8x8xf32>
    %46 = tpu.matmul %44, %45, %cst_21 {dimension_numbers = #tpu.dot_dimension_numbers<[1], [1], [0], [0], [0, 0, 1, 0], [], []>} : vector<8x8xbf16>, vector<8x8xbf16>, vector<8x8xf32> -> vector<8x8xf32>
    "tpu.trace_stop"() : () -> ()
    %cst_22 = arith.constant 0.353553385 : f32
    %47 = vector.broadcast %cst_22 : f32 to vector<8x8xf32>
    %48 = arith.mulf %46, %47 : vector<8x8xf32>
    %cst_23 = arith.constant dense<0xFF800000> : vector<8xf32>
    %49 = vector.multi_reduction <maximumf>, %48, %cst_23 [1] : vector<8x8xf32> to vector<8xf32>
    %50 = vector.shape_cast %49 : vector<8xf32> to vector<8x1xf32>
    %51 = vector.broadcast %50 : vector<8x1xf32> to vector<8x8xf32>
    %52 = arith.subf %48, %51 : vector<8x8xf32>
    %53 = math.exp %52 : vector<8x8xf32>
    %cst_24 = arith.constant dense<0.000000e+00> : vector<8xf32>
    %54 = vector.multi_reduction <add>, %53, %cst_24 [1] : vector<8x8xf32> to vector<8xf32>
    %55 = vector.shape_cast %54 : vector<8xf32> to vector<8x1xf32>
    %56 = tpu.reciprocal %55 {approx = true} : vector<8x1xf32> -> vector<8x1xf32>
    %57 = vector.broadcast %56 : vector<8x1xf32> to vector<8x8xf32>
    %58 = arith.mulf %53, %57 : vector<8x8xf32>
    %59 = arith.truncf %58 : vector<8x8xf32> to vector<8x8xbf16>
    %60 = arith.truncf %43 : vector<8x8xf32> to vector<8x8xbf16>
    %cst_25 = arith.constant dense<0.000000e+00> : vector<8x8xf32>
    %61 = tpu.matmul %59, %60, %cst_25 {dimension_numbers = #tpu.dot_dimension_numbers<[1], [0], [0], [1], [0, 0, 1, 1], [], []>} : vector<8x8xbf16>, vector<8x8xbf16>, vector<8x8xf32> -> vector<8x8xf32>
    %62 = vector.extract_strided_slice %19 {offsets = [0, 16], sizes = [8, 8], strides = [1, 1]} : vector<8x96xf32> to vector<8x8xf32>
    %63 = vector.extract_strided_slice %19 {offsets = [0, 48], sizes = [8, 8], strides = [1, 1]} : vector<8x96xf32> to vector<8x8xf32>
    %64 = vector.extract_strided_slice %19 {offsets = [0, 80], sizes = [8, 8], strides = [1, 1]} : vector<8x96xf32> to vector<8x8xf32>
    %65 = arith.truncf %62 : vector<8x8xf32> to vector<8x8xbf16>
    %66 = arith.truncf %63 : vector<8x8xf32> to vector<8x8xbf16>
    "tpu.trace_start"() <{level = 10 : i32, message = "qd,kd->qk"}> : () -> ()
    %cst_26 = arith.constant dense<0.000000e+00> : vector<8x8xf32>
    %67 = tpu.matmul %65, %66, %cst_26 {dimension_numbers = #tpu.dot_dimension_numbers<[1], [1], [0], [0], [0, 0, 1, 0], [], []>} : vector<8x8xbf16>, vector<8x8xbf16>, vector<8x8xf32> -> vector<8x8xf32>
    "tpu.trace_stop"() : () -> ()
    %cst_27 = arith.constant 0.353553385 : f32
    %68 = vector.broadcast %cst_27 : f32 to vector<8x8xf32>
    %69 = arith.mulf %67, %68 : vector<8x8xf32>
    %cst_28 = arith.constant dense<0xFF800000> : vector<8xf32>
    %70 = vector.multi_reduction <maximumf>, %69, %cst_28 [1] : vector<8x8xf32> to vector<8xf32>
    %71 = vector.shape_cast %70 : vector<8xf32> to vector<8x1xf32>
    %72 = vector.broadcast %71 : vector<8x1xf32> to vector<8x8xf32>
    %73 = arith.subf %69, %72 : vector<8x8xf32>
    %74 = math.exp %73 : vector<8x8xf32>
    %cst_29 = arith.constant dense<0.000000e+00> : vector<8xf32>
    %75 = vector.multi_reduction <add>, %74, %cst_29 [1] : vector<8x8xf32> to vector<8xf32>
    %76 = vector.shape_cast %75 : vector<8xf32> to vector<8x1xf32>
    %77 = tpu.reciprocal %76 {approx = true} : vector<8x1xf32> -> vector<8x1xf32>
    %78 = vector.broadcast %77 : vector<8x1xf32> to vector<8x8xf32>
    %79 = arith.mulf %74, %78 : vector<8x8xf32>
    %80 = arith.truncf %79 : vector<8x8xf32> to vector<8x8xbf16>
    %81 = arith.truncf %64 : vector<8x8xf32> to vector<8x8xbf16>
    %cst_30 = arith.constant dense<0.000000e+00> : vector<8x8xf32>
    %82 = tpu.matmul %80, %81, %cst_30 {dimension_numbers = #tpu.dot_dimension_numbers<[1], [0], [0], [1], [0, 0, 1, 1], [], []>} : vector<8x8xbf16>, vector<8x8xbf16>, vector<8x8xf32> -> vector<8x8xf32>
    %83 = vector.extract_strided_slice %19 {offsets = [0, 24], sizes = [8, 8], strides = [1, 1]} : vector<8x96xf32> to vector<8x8xf32>
    %84 = vector.extract_strided_slice %19 {offsets = [0, 56], sizes = [8, 8], strides = [1, 1]} : vector<8x96xf32> to vector<8x8xf32>
    %85 = vector.extract_strided_slice %19 {offsets = [0, 88], sizes = [8, 8], strides = [1, 1]} : vector<8x96xf32> to vector<8x8xf32>
    %86 = arith.truncf %83 : vector<8x8xf32> to vector<8x8xbf16>
    %87 = arith.truncf %84 : vector<8x8xf32> to vector<8x8xbf16>
    "tpu.trace_start"() <{level = 10 : i32, message = "qd,kd->qk"}> : () -> ()
    %cst_31 = arith.constant dense<0.000000e+00> : vector<8x8xf32>
    %88 = tpu.matmul %86, %87, %cst_31 {dimension_numbers = #tpu.dot_dimension_numbers<[1], [1], [0], [0], [0, 0, 1, 0], [], []>} : vector<8x8xbf16>, vector<8x8xbf16>, vector<8x8xf32> -> vector<8x8xf32>
    "tpu.trace_stop"() : () -> ()
    %cst_32 = arith.constant 0.353553385 : f32
    %89 = vector.broadcast %cst_32 : f32 to vector<8x8xf32>
    %90 = arith.mulf %88, %89 : vector<8x8xf32>
    %cst_33 = arith.constant dense<0xFF800000> : vector<8xf32>
    %91 = vector.multi_reduction <maximumf>, %90, %cst_33 [1] : vector<8x8xf32> to vector<8xf32>
    %92 = vector.shape_cast %91 : vector<8xf32> to vector<8x1xf32>
    %93 = vector.broadcast %92 : vector<8x1xf32> to vector<8x8xf32>
    %94 = arith.subf %90, %93 : vector<8x8xf32>
    %95 = math.exp %94 : vector<8x8xf32>
    %cst_34 = arith.constant dense<0.000000e+00> : vector<8xf32>
    %96 = vector.multi_reduction <add>, %95, %cst_34 [1] : vector<8x8xf32> to vector<8xf32>
    %97 = vector.shape_cast %96 : vector<8xf32> to vector<8x1xf32>
    %98 = tpu.reciprocal %97 {approx = true} : vector<8x1xf32> -> vector<8x1xf32>
    %99 = vector.broadcast %98 : vector<8x1xf32> to vector<8x8xf32>
    %100 = arith.mulf %95, %99 : vector<8x8xf32>
    %101 = arith.truncf %100 : vector<8x8xf32> to vector<8x8xbf16>
    %102 = arith.truncf %85 : vector<8x8xf32> to vector<8x8xbf16>
    %cst_35 = arith.constant dense<0.000000e+00> : vector<8x8xf32>
    %103 = tpu.matmul %101, %102, %cst_35 {dimension_numbers = #tpu.dot_dimension_numbers<[1], [0], [0], [1], [0, 0, 1, 1], [], []>} : vector<8x8xbf16>, vector<8x8xbf16>, vector<8x8xf32> -> vector<8x8xf32>
    %104 = tpu.concatenate %40, %61, %82, %103 in 1 : vector<8x8xf32>, vector<8x8xf32>, vector<8x8xf32>, vector<8x8xf32> -> vector<8x32xf32>
    %c0_36 = arith.constant 0 : index
    %c0_37 = arith.constant 0 : index
    %c0_38 = arith.constant 0 : index
    %105 = vector.load %arg7[%c0_36, %c0_37, %c0_38] : memref<2x32x32xbf16, #tpu.memory_space<vmem>>, vector<1x32x32xbf16>
    %106 = vector.shape_cast %105 : vector<1x32x32xbf16> to vector<32x32xbf16>
    %107 = arith.truncf %104 : vector<8x32xf32> to vector<8x32xbf16>
    %cst_39 = arith.constant dense<0.000000e+00> : vector<8x32xf32>
    %108 = tpu.matmul %107, %106, %cst_39 {dimension_numbers = #tpu.dot_dimension_numbers<[1], [0], [0], [1], [0, 0, 1, 1], [], []>} : vector<8x32xbf16>, vector<32x32xbf16>, vector<8x32xf32> -> vector<8x32xf32>
    %c0_40 = arith.constant 0 : index
    %c0_41 = arith.constant 0 : index
    %c0_42 = arith.constant 0 : index
    %109 = vector.load %arg8[%c0_40, %c0_41, %c0_42] : memref<2x1x32xf32, #tpu.memory_space<vmem>>, vector<1x1x32xf32>
    %110 = vector.shape_cast %109 : vector<1x1x32xf32> to vector<1x32xf32>
    %111 = vector.broadcast %110 : vector<1x32xf32> to vector<8x32xf32>
    %112 = arith.addf %108, %111 : vector<8x32xf32>
    %c0_43 = arith.constant 0 : index
    %c0_44 = arith.constant 0 : index
    %c0_45 = arith.constant 0 : index
    %113 = vector.load %arg9[%c0_43, %c0_44, %c0_45] : memref<2x1x32xf32, #tpu.memory_space<vmem>>, vector<1x1x32xf32>
    %114 = vector.shape_cast %113 : vector<1x1x32xf32> to vector<1x32xf32>
    %c0_46 = arith.constant 0 : index
    %c0_47 = arith.constant 0 : index
    %c0_48 = arith.constant 0 : index
    %115 = vector.load %arg10[%c0_46, %c0_47, %c0_48] : memref<2x1x32xf32, #tpu.memory_space<vmem>>, vector<1x1x32xf32>
    %116 = vector.shape_cast %115 : vector<1x1x32xf32> to vector<1x32xf32>
    %117 = arith.addf %11, %112 : vector<8x32xf32>
    %cst_49 = arith.constant dense<0.000000e+00> : vector<8xf32>
    %118 = vector.multi_reduction <add>, %117, %cst_49 [1] : vector<8x32xf32> to vector<8xf32>
    %119 = vector.shape_cast %118 : vector<8xf32> to vector<8x1xf32>
    %cst_50 = arith.constant 3.200000e+01 : f32
    %120 = vector.broadcast %cst_50 : f32 to vector<8x1xf32>
    %121 = arith.divf %119, %120 : vector<8x1xf32>
    %122 = vector.broadcast %121 : vector<8x1xf32> to vector<8x32xf32>
    %123 = arith.subf %117, %122 : vector<8x32xf32>
    %124 = arith.mulf %123, %123 : vector<8x32xf32>
    %cst_51 = arith.constant dense<0.000000e+00> : vector<8xf32>
    %125 = vector.multi_reduction <add>, %124, %cst_51 [1] : vector<8x32xf32> to vector<8xf32>
    %126 = vector.shape_cast %125 : vector<8xf32> to vector<8x1xf32>
    %cst_52 = arith.constant 3.200000e+01 : f32
    %127 = vector.broadcast %cst_52 : f32 to vector<8x1xf32>
    %128 = arith.divf %126, %127 : vector<8x1xf32>
    %129 = vector.broadcast %121 : vector<8x1xf32> to vector<8x32xf32>
    %130 = arith.subf %117, %129 : vector<8x32xf32>
    %cst_53 = arith.constant 9.99999974E-6 : f32
    %131 = vector.broadcast %cst_53 : f32 to vector<8x1xf32>
    %132 = arith.addf %128, %131 : vector<8x1xf32>
    %133 = math.rsqrt %132 : vector<8x1xf32>
    %134 = vector.broadcast %133 : vector<8x1xf32> to vector<8x32xf32>
    %135 = arith.mulf %130, %134 : vector<8x32xf32>
    %136 = vector.broadcast %114 : vector<1x32xf32> to vector<8x32xf32>
    %137 = arith.mulf %135, %136 : vector<8x32xf32>
    %138 = vector.broadcast %116 : vector<1x32xf32> to vector<8x32xf32>
    %139 = arith.addf %137, %138 : vector<8x32xf32>
    %c0_54 = arith.constant 0 : index
    %c0_55 = arith.constant 0 : index
    %c0_56 = arith.constant 0 : index
    %140 = vector.load %arg11[%c0_54, %c0_55, %c0_56] : memref<2x32x64xbf16, #tpu.memory_space<vmem>>, vector<1x32x64xbf16>
    %141 = vector.shape_cast %140 : vector<1x32x64xbf16> to vector<32x64xbf16>
    %142 = arith.truncf %139 : vector<8x32xf32> to vector<8x32xbf16>
    %cst_57 = arith.constant dense<0.000000e+00> : vector<8x64xf32>
    %143 = tpu.matmul %142, %141, %cst_57 {dimension_numbers = #tpu.dot_dimension_numbers<[1], [0], [0], [1], [0, 0, 1, 1], [], []>} : vector<8x32xbf16>, vector<32x64xbf16>, vector<8x64xf32> -> vector<8x64xf32>
    %c0_58 = arith.constant 0 : index
    %c0_59 = arith.constant 0 : index
    %c0_60 = arith.constant 0 : index
    %144 = vector.load %arg12[%c0_58, %c0_59, %c0_60] : memref<2x1x64xf32, #tpu.memory_space<vmem>>, vector<1x1x64xf32>
    %145 = vector.shape_cast %144 : vector<1x1x64xf32> to vector<1x64xf32>
    %146 = vector.broadcast %145 : vector<1x64xf32> to vector<8x64xf32>
    %147 = arith.addf %143, %146 : vector<8x64xf32>
    %cst_61 = arith.constant 0.000000e+00 : f32
    %148 = vector.broadcast %cst_61 : f32 to vector<8x64xf32>
    %149 = arith.maximumf %147, %148 : vector<8x64xf32>
    %c0_62 = arith.constant 0 : index
    %c0_63 = arith.constant 0 : index
    %c0_64 = arith.constant 0 : index
    %150 = vector.load %arg13[%c0_62, %c0_63, %c0_64] : memref<2x64x32xbf16, #tpu.memory_space<vmem>>, vector<1x64x32xbf16>
    %151 = vector.shape_cast %150 : vector<1x64x32xbf16> to vector<64x32xbf16>
    %152 = arith.truncf %149 : vector<8x64xf32> to vector<8x64xbf16>
    %cst_65 = arith.constant dense<0.000000e+00> : vector<8x32xf32>
    %153 = tpu.matmul %152, %151, %cst_65 {dimension_numbers = #tpu.dot_dimension_numbers<[1], [0], [0], [1], [0, 0, 1, 1], [], []>} : vector<8x64xbf16>, vector<64x32xbf16>, vector<8x32xf32> -> vector<8x32xf32>
    %c0_66 = arith.constant 0 : index
    %c0_67 = arith.constant 0 : index
    %c0_68 = arith.constant 0 : index
    %154 = vector.load %arg14[%c0_66, %c0_67, %c0_68] : memref<2x1x32xf32, #tpu.memory_space<vmem>>, vector<1x1x32xf32>
    %155 = vector.shape_cast %154 : vector<1x1x32xf32> to vector<1x32xf32>
    %156 = vector.broadcast %155 : vector<1x32xf32> to vector<8x32xf32>
    %157 = arith.addf %153, %156 : vector<8x32xf32>
    %c0_69 = arith.constant 0 : index
    %c0_70 = arith.constant 0 : index
    %c0_71 = arith.constant 0 : index
    %158 = vector.load %arg15[%c0_69, %c0_70, %c0_71] : memref<2x1x32xf32, #tpu.memory_space<vmem>>, vector<1x1x32xf32>
    %159 = vector.shape_cast %158 : vector<1x1x32xf32> to vector<1x32xf32>
    %c0_72 = arith.constant 0 : index
    %c0_73 = arith.constant 0 : index
    %c0_74 = arith.constant 0 : index
    %160 = vector.load %arg16[%c0_72, %c0_73, %c0_74] : memref<2x1x32xf32, #tpu.memory_space<vmem>>, vector<1x1x32xf32>
    %161 = vector.shape_cast %160 : vector<1x1x32xf32> to vector<1x32xf32>
    %162 = arith.addf %139, %157 : vector<8x32xf32>
    %cst_75 = arith.constant dense<0.000000e+00> : vector<8xf32>
    %163 = vector.multi_reduction <add>, %162, %cst_75 [1] : vector<8x32xf32> to vector<8xf32>
    %164 = vector.shape_cast %163 : vector<8xf32> to vector<8x1xf32>
    %cst_76 = arith.constant 3.200000e+01 : f32
    %165 = vector.broadcast %cst_76 : f32 to vector<8x1xf32>
    %166 = arith.divf %164, %165 : vector<8x1xf32>
    %167 = vector.broadcast %166 : vector<8x1xf32> to vector<8x32xf32>
    %168 = arith.subf %162, %167 : vector<8x32xf32>
    %169 = arith.mulf %168, %168 : vector<8x32xf32>
    %cst_77 = arith.constant dense<0.000000e+00> : vector<8xf32>
    %170 = vector.multi_reduction <add>, %169, %cst_77 [1] : vector<8x32xf32> to vector<8xf32>
    %171 = vector.shape_cast %170 : vector<8xf32> to vector<8x1xf32>
    %cst_78 = arith.constant 3.200000e+01 : f32
    %172 = vector.broadcast %cst_78 : f32 to vector<8x1xf32>
    %173 = arith.divf %171, %172 : vector<8x1xf32>
    %174 = vector.broadcast %166 : vector<8x1xf32> to vector<8x32xf32>
    %175 = arith.subf %162, %174 : vector<8x32xf32>
    %cst_79 = arith.constant 9.99999974E-6 : f32
    %176 = vector.broadcast %cst_79 : f32 to vector<8x1xf32>
    %177 = arith.addf %173, %176 : vector<8x1xf32>
    %178 = math.rsqrt %177 : vector<8x1xf32>
    %179 = vector.broadcast %178 : vector<8x1xf32> to vector<8x32xf32>
    %180 = arith.mulf %175, %179 : vector<8x32xf32>
    %181 = vector.broadcast %159 : vector<1x32xf32> to vector<8x32xf32>
    %182 = arith.mulf %180, %181 : vector<8x32xf32>
    %183 = vector.broadcast %161 : vector<1x32xf32> to vector<8x32xf32>
    %184 = arith.addf %182, %183 : vector<8x32xf32>
    %c1 = arith.constant 1 : index
    %c0_80 = arith.constant 0 : index
    %c0_81 = arith.constant 0 : index
    %185 = vector.load %arg5[%c1, %c0_80, %c0_81] : memref<2x32x96xbf16, #tpu.memory_space<vmem>>, vector<1x32x96xbf16>
    %186 = vector.shape_cast %185 : vector<1x32x96xbf16> to vector<32x96xbf16>
    %187 = arith.truncf %184 : vector<8x32xf32> to vector<8x32xbf16>
    %cst_82 = arith.constant dense<0.000000e+00> : vector<8x96xf32>
    %188 = tpu.matmul %187, %186, %cst_82 {dimension_numbers = #tpu.dot_dimension_numbers<[1], [0], [0], [1], [0, 0, 1, 1], [], []>} : vector<8x32xbf16>, vector<32x96xbf16>, vector<8x96xf32> -> vector<8x96xf32>
    %c1_83 = arith.constant 1 : index
    %c0_84 = arith.constant 0 : index
    %c0_85 = arith.constant 0 : index
    %189 = vector.load %arg6[%c1_83, %c0_84, %c0_85] : memref<2x1x96xf32, #tpu.memory_space<vmem>>, vector<1x1x96xf32>
    %190 = vector.shape_cast %189 : vector<1x1x96xf32> to vector<1x96xf32>
    %191 = vector.broadcast %190 : vector<1x96xf32> to vector<8x96xf32>
    %192 = arith.addf %188, %191 : vector<8x96xf32>
    %193 = vector.extract_strided_slice %192 {offsets = [0, 0], sizes = [8, 8], strides = [1, 1]} : vector<8x96xf32> to vector<8x8xf32>
    %194 = vector.extract_strided_slice %192 {offsets = [0, 32], sizes = [8, 8], strides = [1, 1]} : vector<8x96xf32> to vector<8x8xf32>
    %195 = vector.extract_strided_slice %192 {offsets = [0, 64], sizes = [8, 8], strides = [1, 1]} : vector<8x96xf32> to vector<8x8xf32>
    %196 = arith.truncf %193 : vector<8x8xf32> to vector<8x8xbf16>
    %197 = arith.truncf %194 : vector<8x8xf32> to vector<8x8xbf16>
    "tpu.trace_start"() <{level = 10 : i32, message = "qd,kd->qk"}> : () -> ()
    %cst_86 = arith.constant dense<0.000000e+00> : vector<8x8xf32>
    %198 = tpu.matmul %196, %197, %cst_86 {dimension_numbers = #tpu.dot_dimension_numbers<[1], [1], [0], [0], [0, 0, 1, 0], [], []>} : vector<8x8xbf16>, vector<8x8xbf16>, vector<8x8xf32> -> vector<8x8xf32>
    "tpu.trace_stop"() : () -> ()
    %cst_87 = arith.constant 0.353553385 : f32
    %199 = vector.broadcast %cst_87 : f32 to vector<8x8xf32>
    %200 = arith.mulf %198, %199 : vector<8x8xf32>
    %cst_88 = arith.constant dense<0xFF800000> : vector<8xf32>
    %201 = vector.multi_reduction <maximumf>, %200, %cst_88 [1] : vector<8x8xf32> to vector<8xf32>
    %202 = vector.shape_cast %201 : vector<8xf32> to vector<8x1xf32>
    %203 = vector.broadcast %202 : vector<8x1xf32> to vector<8x8xf32>
    %204 = arith.subf %200, %203 : vector<8x8xf32>
    %205 = math.exp %204 : vector<8x8xf32>
    %cst_89 = arith.constant dense<0.000000e+00> : vector<8xf32>
    %206 = vector.multi_reduction <add>, %205, %cst_89 [1] : vector<8x8xf32> to vector<8xf32>
    %207 = vector.shape_cast %206 : vector<8xf32> to vector<8x1xf32>
    %208 = tpu.reciprocal %207 {approx = true} : vector<8x1xf32> -> vector<8x1xf32>
    %209 = vector.broadcast %208 : vector<8x1xf32> to vector<8x8xf32>
    %210 = arith.mulf %205, %209 : vector<8x8xf32>
    %211 = arith.truncf %210 : vector<8x8xf32> to vector<8x8xbf16>
    %212 = arith.truncf %195 : vector<8x8xf32> to vector<8x8xbf16>
    %cst_90 = arith.constant dense<0.000000e+00> : vector<8x8xf32>
    %213 = tpu.matmul %211, %212, %cst_90 {dimension_numbers = #tpu.dot_dimension_numbers<[1], [0], [0], [1], [0, 0, 1, 1], [], []>} : vector<8x8xbf16>, vector<8x8xbf16>, vector<8x8xf32> -> vector<8x8xf32>
    %214 = vector.extract_strided_slice %192 {offsets = [0, 8], sizes = [8, 8], strides = [1, 1]} : vector<8x96xf32> to vector<8x8xf32>
    %215 = vector.extract_strided_slice %192 {offsets = [0, 40], sizes = [8, 8], strides = [1, 1]} : vector<8x96xf32> to vector<8x8xf32>
    %216 = vector.extract_strided_slice %192 {offsets = [0, 72], sizes = [8, 8], strides = [1, 1]} : vector<8x96xf32> to vector<8x8xf32>
    %217 = arith.truncf %214 : vector<8x8xf32> to vector<8x8xbf16>
    %218 = arith.truncf %215 : vector<8x8xf32> to vector<8x8xbf16>
    "tpu.trace_start"() <{level = 10 : i32, message = "qd,kd->qk"}> : () -> ()
    %cst_91 = arith.constant dense<0.000000e+00> : vector<8x8xf32>
    %219 = tpu.matmul %217, %218, %cst_91 {dimension_numbers = #tpu.dot_dimension_numbers<[1], [1], [0], [0], [0, 0, 1, 0], [], []>} : vector<8x8xbf16>, vector<8x8xbf16>, vector<8x8xf32> -> vector<8x8xf32>
    "tpu.trace_stop"() : () -> ()
    %cst_92 = arith.constant 0.353553385 : f32
    %220 = vector.broadcast %cst_92 : f32 to vector<8x8xf32>
    %221 = arith.mulf %219, %220 : vector<8x8xf32>
    %cst_93 = arith.constant dense<0xFF800000> : vector<8xf32>
    %222 = vector.multi_reduction <maximumf>, %221, %cst_93 [1] : vector<8x8xf32> to vector<8xf32>
    %223 = vector.shape_cast %222 : vector<8xf32> to vector<8x1xf32>
    %224 = vector.broadcast %223 : vector<8x1xf32> to vector<8x8xf32>
    %225 = arith.subf %221, %224 : vector<8x8xf32>
    %226 = math.exp %225 : vector<8x8xf32>
    %cst_94 = arith.constant dense<0.000000e+00> : vector<8xf32>
    %227 = vector.multi_reduction <add>, %226, %cst_94 [1] : vector<8x8xf32> to vector<8xf32>
    %228 = vector.shape_cast %227 : vector<8xf32> to vector<8x1xf32>
    %229 = tpu.reciprocal %228 {approx = true} : vector<8x1xf32> -> vector<8x1xf32>
    %230 = vector.broadcast %229 : vector<8x1xf32> to vector<8x8xf32>
    %231 = arith.mulf %226, %230 : vector<8x8xf32>
    %232 = arith.truncf %231 : vector<8x8xf32> to vector<8x8xbf16>
    %233 = arith.truncf %216 : vector<8x8xf32> to vector<8x8xbf16>
    %cst_95 = arith.constant dense<0.000000e+00> : vector<8x8xf32>
    %234 = tpu.matmul %232, %233, %cst_95 {dimension_numbers = #tpu.dot_dimension_numbers<[1], [0], [0], [1], [0, 0, 1, 1], [], []>} : vector<8x8xbf16>, vector<8x8xbf16>, vector<8x8xf32> -> vector<8x8xf32>
    %235 = vector.extract_strided_slice %192 {offsets = [0, 16], sizes = [8, 8], strides = [1, 1]} : vector<8x96xf32> to vector<8x8xf32>
    %236 = vector.extract_strided_slice %192 {offsets = [0, 48], sizes = [8, 8], strides = [1, 1]} : vector<8x96xf32> to vector<8x8xf32>
    %237 = vector.extract_strided_slice %192 {offsets = [0, 80], sizes = [8, 8], strides = [1, 1]} : vector<8x96xf32> to vector<8x8xf32>
    %238 = arith.truncf %235 : vector<8x8xf32> to vector<8x8xbf16>
    %239 = arith.truncf %236 : vector<8x8xf32> to vector<8x8xbf16>
    "tpu.trace_start"() <{level = 10 : i32, message = "qd,kd->qk"}> : () -> ()
    %cst_96 = arith.constant dense<0.000000e+00> : vector<8x8xf32>
    %240 = tpu.matmul %238, %239, %cst_96 {dimension_numbers = #tpu.dot_dimension_numbers<[1], [1], [0], [0], [0, 0, 1, 0], [], []>} : vector<8x8xbf16>, vector<8x8xbf16>, vector<8x8xf32> -> vector<8x8xf32>
    "tpu.trace_stop"() : () -> ()
    %cst_97 = arith.constant 0.353553385 : f32
    %241 = vector.broadcast %cst_97 : f32 to vector<8x8xf32>
    %242 = arith.mulf %240, %241 : vector<8x8xf32>
    %cst_98 = arith.constant dense<0xFF800000> : vector<8xf32>
    %243 = vector.multi_reduction <maximumf>, %242, %cst_98 [1] : vector<8x8xf32> to vector<8xf32>
    %244 = vector.shape_cast %243 : vector<8xf32> to vector<8x1xf32>
    %245 = vector.broadcast %244 : vector<8x1xf32> to vector<8x8xf32>
    %246 = arith.subf %242, %245 : vector<8x8xf32>
    %247 = math.exp %246 : vector<8x8xf32>
    %cst_99 = arith.constant dense<0.000000e+00> : vector<8xf32>
    %248 = vector.multi_reduction <add>, %247, %cst_99 [1] : vector<8x8xf32> to vector<8xf32>
    %249 = vector.shape_cast %248 : vector<8xf32> to vector<8x1xf32>
    %250 = tpu.reciprocal %249 {approx = true} : vector<8x1xf32> -> vector<8x1xf32>
    %251 = vector.broadcast %250 : vector<8x1xf32> to vector<8x8xf32>
    %252 = arith.mulf %247, %251 : vector<8x8xf32>
    %253 = arith.truncf %252 : vector<8x8xf32> to vector<8x8xbf16>
    %254 = arith.truncf %237 : vector<8x8xf32> to vector<8x8xbf16>
    %cst_100 = arith.constant dense<0.000000e+00> : vector<8x8xf32>
    %255 = tpu.matmul %253, %254, %cst_100 {dimension_numbers = #tpu.dot_dimension_numbers<[1], [0], [0], [1], [0, 0, 1, 1], [], []>} : vector<8x8xbf16>, vector<8x8xbf16>, vector<8x8xf32> -> vector<8x8xf32>
    %256 = vector.extract_strided_slice %192 {offsets = [0, 24], sizes = [8, 8], strides = [1, 1]} : vector<8x96xf32> to vector<8x8xf32>
    %257 = vector.extract_strided_slice %192 {offsets = [0, 56], sizes = [8, 8], strides = [1, 1]} : vector<8x96xf32> to vector<8x8xf32>
    %258 = vector.extract_strided_slice %192 {offsets = [0, 88], sizes = [8, 8], strides = [1, 1]} : vector<8x96xf32> to vector<8x8xf32>
    %259 = arith.truncf %256 : vector<8x8xf32> to vector<8x8xbf16>
    %260 = arith.truncf %257 : vector<8x8xf32> to vector<8x8xbf16>
    "tpu.trace_start"() <{level = 10 : i32, message = "qd,kd->qk"}> : () -> ()
    %cst_101 = arith.constant dense<0.000000e+00> : vector<8x8xf32>
    %261 = tpu.matmul %259, %260, %cst_101 {dimension_numbers = #tpu.dot_dimension_numbers<[1], [1], [0], [0], [0, 0, 1, 0], [], []>} : vector<8x8xbf16>, vector<8x8xbf16>, vector<8x8xf32> -> vector<8x8xf32>
    "tpu.trace_stop"() : () -> ()
    %cst_102 = arith.constant 0.353553385 : f32
    %262 = vector.broadcast %cst_102 : f32 to vector<8x8xf32>
    %263 = arith.mulf %261, %262 : vector<8x8xf32>
    %cst_103 = arith.constant dense<0xFF800000> : vector<8xf32>
    %264 = vector.multi_reduction <maximumf>, %263, %cst_103 [1] : vector<8x8xf32> to vector<8xf32>
    %265 = vector.shape_cast %264 : vector<8xf32> to vector<8x1xf32>
    %266 = vector.broadcast %265 : vector<8x1xf32> to vector<8x8xf32>
    %267 = arith.subf %263, %266 : vector<8x8xf32>
    %268 = math.exp %267 : vector<8x8xf32>
    %cst_104 = arith.constant dense<0.000000e+00> : vector<8xf32>
    %269 = vector.multi_reduction <add>, %268, %cst_104 [1] : vector<8x8xf32> to vector<8xf32>
    %270 = vector.shape_cast %269 : vector<8xf32> to vector<8x1xf32>
    %271 = tpu.reciprocal %270 {approx = true} : vector<8x1xf32> -> vector<8x1xf32>
    %272 = vector.broadcast %271 : vector<8x1xf32> to vector<8x8xf32>
    %273 = arith.mulf %268, %272 : vector<8x8xf32>
    %274 = arith.truncf %273 : vector<8x8xf32> to vector<8x8xbf16>
    %275 = arith.truncf %258 : vector<8x8xf32> to vector<8x8xbf16>
    %cst_105 = arith.constant dense<0.000000e+00> : vector<8x8xf32>
    %276 = tpu.matmul %274, %275, %cst_105 {dimension_numbers = #tpu.dot_dimension_numbers<[1], [0], [0], [1], [0, 0, 1, 1], [], []>} : vector<8x8xbf16>, vector<8x8xbf16>, vector<8x8xf32> -> vector<8x8xf32>
    %277 = tpu.concatenate %213, %234, %255, %276 in 1 : vector<8x8xf32>, vector<8x8xf32>, vector<8x8xf32>, vector<8x8xf32> -> vector<8x32xf32>
    %c1_106 = arith.constant 1 : index
    %c0_107 = arith.constant 0 : index
    %c0_108 = arith.constant 0 : index
    %278 = vector.load %arg7[%c1_106, %c0_107, %c0_108] : memref<2x32x32xbf16, #tpu.memory_space<vmem>>, vector<1x32x32xbf16>
    %279 = vector.shape_cast %278 : vector<1x32x32xbf16> to vector<32x32xbf16>
    %280 = arith.truncf %277 : vector<8x32xf32> to vector<8x32xbf16>
    %cst_109 = arith.constant dense<0.000000e+00> : vector<8x32xf32>
    %281 = tpu.matmul %280, %279, %cst_109 {dimension_numbers = #tpu.dot_dimension_numbers<[1], [0], [0], [1], [0, 0, 1, 1], [], []>} : vector<8x32xbf16>, vector<32x32xbf16>, vector<8x32xf32> -> vector<8x32xf32>
    %c1_110 = arith.constant 1 : index
    %c0_111 = arith.constant 0 : index
    %c0_112 = arith.constant 0 : index
    %282 = vector.load %arg8[%c1_110, %c0_111, %c0_112] : memref<2x1x32xf32, #tpu.memory_space<vmem>>, vector<1x1x32xf32>
    %283 = vector.shape_cast %282 : vector<1x1x32xf32> to vector<1x32xf32>
    %284 = vector.broadcast %283 : vector<1x32xf32> to vector<8x32xf32>
    %285 = arith.addf %281, %284 : vector<8x32xf32>
    %c1_113 = arith.constant 1 : index
    %c0_114 = arith.constant 0 : index
    %c0_115 = arith.constant 0 : index
    %286 = vector.load %arg9[%c1_113, %c0_114, %c0_115] : memref<2x1x32xf32, #tpu.memory_space<vmem>>, vector<1x1x32xf32>
    %287 = vector.shape_cast %286 : vector<1x1x32xf32> to vector<1x32xf32>
    %c1_116 = arith.constant 1 : index
    %c0_117 = arith.constant 0 : index
    %c0_118 = arith.constant 0 : index
    %288 = vector.load %arg10[%c1_116, %c0_117, %c0_118] : memref<2x1x32xf32, #tpu.memory_space<vmem>>, vector<1x1x32xf32>
    %289 = vector.shape_cast %288 : vector<1x1x32xf32> to vector<1x32xf32>
    %290 = arith.addf %184, %285 : vector<8x32xf32>
    %cst_119 = arith.constant dense<0.000000e+00> : vector<8xf32>
    %291 = vector.multi_reduction <add>, %290, %cst_119 [1] : vector<8x32xf32> to vector<8xf32>
    %292 = vector.shape_cast %291 : vector<8xf32> to vector<8x1xf32>
    %cst_120 = arith.constant 3.200000e+01 : f32
    %293 = vector.broadcast %cst_120 : f32 to vector<8x1xf32>
    %294 = arith.divf %292, %293 : vector<8x1xf32>
    %295 = vector.broadcast %294 : vector<8x1xf32> to vector<8x32xf32>
    %296 = arith.subf %290, %295 : vector<8x32xf32>
    %297 = arith.mulf %296, %296 : vector<8x32xf32>
    %cst_121 = arith.constant dense<0.000000e+00> : vector<8xf32>
    %298 = vector.multi_reduction <add>, %297, %cst_121 [1] : vector<8x32xf32> to vector<8xf32>
    %299 = vector.shape_cast %298 : vector<8xf32> to vector<8x1xf32>
    %cst_122 = arith.constant 3.200000e+01 : f32
    %300 = vector.broadcast %cst_122 : f32 to vector<8x1xf32>
    %301 = arith.divf %299, %300 : vector<8x1xf32>
    %302 = vector.broadcast %294 : vector<8x1xf32> to vector<8x32xf32>
    %303 = arith.subf %290, %302 : vector<8x32xf32>
    %cst_123 = arith.constant 9.99999974E-6 : f32
    %304 = vector.broadcast %cst_123 : f32 to vector<8x1xf32>
    %305 = arith.addf %301, %304 : vector<8x1xf32>
    %306 = math.rsqrt %305 : vector<8x1xf32>
    %307 = vector.broadcast %306 : vector<8x1xf32> to vector<8x32xf32>
    %308 = arith.mulf %303, %307 : vector<8x32xf32>
    %309 = vector.broadcast %287 : vector<1x32xf32> to vector<8x32xf32>
    %310 = arith.mulf %308, %309 : vector<8x32xf32>
    %311 = vector.broadcast %289 : vector<1x32xf32> to vector<8x32xf32>
    %312 = arith.addf %310, %311 : vector<8x32xf32>
    %c1_124 = arith.constant 1 : index
    %c0_125 = arith.constant 0 : index
    %c0_126 = arith.constant 0 : index
    %313 = vector.load %arg11[%c1_124, %c0_125, %c0_126] : memref<2x32x64xbf16, #tpu.memory_space<vmem>>, vector<1x32x64xbf16>
    %314 = vector.shape_cast %313 : vector<1x32x64xbf16> to vector<32x64xbf16>
    %315 = arith.truncf %312 : vector<8x32xf32> to vector<8x32xbf16>
    %cst_127 = arith.constant dense<0.000000e+00> : vector<8x64xf32>
    %316 = tpu.matmul %315, %314, %cst_127 {dimension_numbers = #tpu.dot_dimension_numbers<[1], [0], [0], [1], [0, 0, 1, 1], [], []>} : vector<8x32xbf16>, vector<32x64xbf16>, vector<8x64xf32> -> vector<8x64xf32>
    %c1_128 = arith.constant 1 : index
    %c0_129 = arith.constant 0 : index
    %c0_130 = arith.constant 0 : index
    %317 = vector.load %arg12[%c1_128, %c0_129, %c0_130] : memref<2x1x64xf32, #tpu.memory_space<vmem>>, vector<1x1x64xf32>
    %318 = vector.shape_cast %317 : vector<1x1x64xf32> to vector<1x64xf32>
    %319 = vector.broadcast %318 : vector<1x64xf32> to vector<8x64xf32>
    %320 = arith.addf %316, %319 : vector<8x64xf32>
    %cst_131 = arith.constant 0.000000e+00 : f32
    %321 = vector.broadcast %cst_131 : f32 to vector<8x64xf32>
    %322 = arith.maximumf %320, %321 : vector<8x64xf32>
    %c1_132 = arith.constant 1 : index
    %c0_133 = arith.constant 0 : index
    %c0_134 = arith.constant 0 : index
    %323 = vector.load %arg13[%c1_132, %c0_133, %c0_134] : memref<2x64x32xbf16, #tpu.memory_space<vmem>>, vector<1x64x32xbf16>
    %324 = vector.shape_cast %323 : vector<1x64x32xbf16> to vector<64x32xbf16>
    %325 = arith.truncf %322 : vector<8x64xf32> to vector<8x64xbf16>
    %cst_135 = arith.constant dense<0.000000e+00> : vector<8x32xf32>
    %326 = tpu.matmul %325, %324, %cst_135 {dimension_numbers = #tpu.dot_dimension_numbers<[1], [0], [0], [1], [0, 0, 1, 1], [], []>} : vector<8x64xbf16>, vector<64x32xbf16>, vector<8x32xf32> -> vector<8x32xf32>
    %c1_136 = arith.constant 1 : index
    %c0_137 = arith.constant 0 : index
    %c0_138 = arith.constant 0 : index
    %327 = vector.load %arg14[%c1_136, %c0_137, %c0_138] : memref<2x1x32xf32, #tpu.memory_space<vmem>>, vector<1x1x32xf32>
    %328 = vector.shape_cast %327 : vector<1x1x32xf32> to vector<1x32xf32>
    %329 = vector.broadcast %328 : vector<1x32xf32> to vector<8x32xf32>
    %330 = arith.addf %326, %329 : vector<8x32xf32>
    %c1_139 = arith.constant 1 : index
    %c0_140 = arith.constant 0 : index
    %c0_141 = arith.constant 0 : index
    %331 = vector.load %arg15[%c1_139, %c0_140, %c0_141] : memref<2x1x32xf32, #tpu.memory_space<vmem>>, vector<1x1x32xf32>
    %332 = vector.shape_cast %331 : vector<1x1x32xf32> to vector<1x32xf32>
    %c1_142 = arith.constant 1 : index
    %c0_143 = arith.constant 0 : index
    %c0_144 = arith.constant 0 : index
    %333 = vector.load %arg16[%c1_142, %c0_143, %c0_144] : memref<2x1x32xf32, #tpu.memory_space<vmem>>, vector<1x1x32xf32>
    %334 = vector.shape_cast %333 : vector<1x1x32xf32> to vector<1x32xf32>
    %335 = arith.addf %312, %330 : vector<8x32xf32>
    %cst_145 = arith.constant dense<0.000000e+00> : vector<8xf32>
    %336 = vector.multi_reduction <add>, %335, %cst_145 [1] : vector<8x32xf32> to vector<8xf32>
    %337 = vector.shape_cast %336 : vector<8xf32> to vector<8x1xf32>
    %cst_146 = arith.constant 3.200000e+01 : f32
    %338 = vector.broadcast %cst_146 : f32 to vector<8x1xf32>
    %339 = arith.divf %337, %338 : vector<8x1xf32>
    %340 = vector.broadcast %339 : vector<8x1xf32> to vector<8x32xf32>
    %341 = arith.subf %335, %340 : vector<8x32xf32>
    %342 = arith.mulf %341, %341 : vector<8x32xf32>
    %cst_147 = arith.constant dense<0.000000e+00> : vector<8xf32>
    %343 = vector.multi_reduction <add>, %342, %cst_147 [1] : vector<8x32xf32> to vector<8xf32>
    %344 = vector.shape_cast %343 : vector<8xf32> to vector<8x1xf32>
    %cst_148 = arith.constant 3.200000e+01 : f32
    %345 = vector.broadcast %cst_148 : f32 to vector<8x1xf32>
    %346 = arith.divf %344, %345 : vector<8x1xf32>
    %347 = vector.broadcast %339 : vector<8x1xf32> to vector<8x32xf32>
    %348 = arith.subf %335, %347 : vector<8x32xf32>
    %cst_149 = arith.constant 9.99999974E-6 : f32
    %349 = vector.broadcast %cst_149 : f32 to vector<8x1xf32>
    %350 = arith.addf %346, %349 : vector<8x1xf32>
    %351 = math.rsqrt %350 : vector<8x1xf32>
    %352 = vector.broadcast %351 : vector<8x1xf32> to vector<8x32xf32>
    %353 = arith.mulf %348, %352 : vector<8x32xf32>
    %354 = vector.broadcast %332 : vector<1x32xf32> to vector<8x32xf32>
    %355 = arith.mulf %353, %354 : vector<8x32xf32>
    %356 = vector.broadcast %334 : vector<1x32xf32> to vector<8x32xf32>
    %357 = arith.addf %355, %356 : vector<8x32xf32>
    %358 = vector.extract_strided_slice %357 {offsets = [7, 0], sizes = [1, 32], strides = [1, 1]} : vector<8x32xf32> to vector<1x32xf32>
    %c0_150 = arith.constant 0 : index
    %c0_151 = arith.constant 0 : index
    %359 = vector.load %arg17[%c0_150, %c0_151] : memref<32x64xbf16, #tpu.memory_space<vmem>>, vector<32x64xbf16>
    %360 = arith.truncf %358 : vector<1x32xf32> to vector<1x32xbf16>
    %cst_152 = arith.constant dense<0.000000e+00> : vector<1x64xf32>
    %361 = tpu.matmul %360, %359, %cst_152 {dimension_numbers = #tpu.dot_dimension_numbers<[1], [0], [0], [1], [0, 0, 1, 1], [], []>} : vector<1x32xbf16>, vector<32x64xbf16>, vector<1x64xf32> -> vector<1x64xf32>
    %c0_153 = arith.constant 0 : index
    %c0_154 = arith.constant 0 : index
    %362 = vector.load %arg18[%c0_153, %c0_154] : memref<1x64xf32, #tpu.memory_space<vmem>>, vector<1x64xf32>
    %363 = arith.addf %361, %362 : vector<1x64xf32>
    %cst_155 = arith.constant 0.000000e+00 : f32
    %364 = vector.broadcast %cst_155 : f32 to vector<1x64xf32>
    %365 = arith.maximumf %363, %364 : vector<1x64xf32>
    %c0_156 = arith.constant 0 : index
    %c0_157 = arith.constant 0 : index
    %366 = vector.load %arg19[%c0_156, %c0_157] : memref<64x1xbf16, #tpu.memory_space<vmem>>, vector<64x1xbf16>
    %367 = arith.truncf %365 : vector<1x64xf32> to vector<1x64xbf16>
    %cst_158 = arith.constant dense<0.000000e+00> : vector<1x1xf32>
    %368 = tpu.matmul %367, %366, %cst_158 {dimension_numbers = #tpu.dot_dimension_numbers<[1], [0], [0], [1], [0, 0, 1, 1], [], []>} : vector<1x64xbf16>, vector<64x1xbf16>, vector<1x1xf32> -> vector<1x1xf32>
    %c0_159 = arith.constant 0 : index
    %c0_160 = arith.constant 0 : index
    %369 = vector.load %arg20[%c0_159, %c0_160] : memref<1x1xf32, #tpu.memory_space<vmem>>, vector<1x1xf32>
    %370 = arith.addf %368, %369 : vector<1x1xf32>
    %371 = vector.shape_cast %370 : vector<1x1xf32> to vector<1x1x1xf32>
    %c0_161 = arith.constant 0 : index
    %c0_162 = arith.constant 0 : index
    %c0_163 = arith.constant 0 : index
    %372 = vector.load %arg21[%c0_161, %c0_162, %c0_163] : memref<1x1x1xf32, #tpu.memory_space<vmem>>, vector<1x1x1xf32>
    tpu.vector_store %arg21[%c0_161, %c0_162, %c0_163], %371 {strides = array<i32>} : memref<1x1x1xf32, #tpu.memory_space<vmem>>, vector<1x1x1xf32>,
    return
  }
  func.func @transform_0(%arg0: i32) -> (i32, i32, i32) {
    %c0_i32 = arith.constant 0 : i32
    %c0_i32_0 = arith.constant 0 : i32
    %c0_i32_1 = arith.constant 0 : i32
    return %arg0, %c0_i32, %c0_i32_0 : i32, i32, i32
  }
  func.func @transform_1(%arg0: i32) -> (i32, i32) {
    %c0_i32 = arith.constant 0 : i32
    %c0_i32_0 = arith.constant 0 : i32
    %c0_i32_1 = arith.constant 0 : i32
    return %c0_i32, %c0_i32_0 : i32, i32
  }
  func.func @transform_2(%arg0: i32) -> (i32, i32) {
    %c0_i32 = arith.constant 0 : i32
    %c0_i32_0 = arith.constant 0 : i32
    %c0_i32_1 = arith.constant 0 : i32
    return %c0_i32, %c0_i32_0 : i32, i32
  }
  func.func @transform_3(%arg0: i32) -> (i32, i32) {
    %c0_i32 = arith.constant 0 : i32
    %c0_i32_0 = arith.constant 0 : i32
    %c0_i32_1 = arith.constant 0 : i32
    return %c0_i32, %c0_i32_0 : i32, i32
  }
  func.func @transform_4(%arg0: i32) -> (i32, i32, i32) {
    %c0_i32 = arith.constant 0 : i32
    %c0_i32_0 = arith.constant 0 : i32
    %c0_i32_1 = arith.constant 0 : i32
    %c0_i32_2 = arith.constant 0 : i32
    return %c0_i32, %c0_i32_0, %c0_i32_1 : i32, i32, i32
  }
  func.func @transform_5(%arg0: i32) -> (i32, i32, i32) {
    %c0_i32 = arith.constant 0 : i32
    %c0_i32_0 = arith.constant 0 : i32
    %c0_i32_1 = arith.constant 0 : i32
    %c0_i32_2 = arith.constant 0 : i32
    return %c0_i32, %c0_i32_0, %c0_i32_1 : i32, i32, i32
  }
  func.func @transform_6(%arg0: i32) -> (i32, i32, i32) {
    %c0_i32 = arith.constant 0 : i32
    %c0_i32_0 = arith.constant 0 : i32
    %c0_i32_1 = arith.constant 0 : i32
    %c0_i32_2 = arith.constant 0 : i32
    return %c0_i32, %c0_i32_0, %c0_i32_1 : i32, i32, i32
  }
  func.func @transform_7(%arg0: i32) -> (i32, i32, i32) {
    %c0_i32 = arith.constant 0 : i32
    %c0_i32_0 = arith.constant 0 : i32
    %c0_i32_1 = arith.constant 0 : i32
    %c0_i32_2 = arith.constant 0 : i32
    return %c0_i32, %c0_i32_0, %c0_i32_1 : i32, i32, i32
  }
  func.func @transform_8(%arg0: i32) -> (i32, i32, i32) {
    %c0_i32 = arith.constant 0 : i32
    %c0_i32_0 = arith.constant 0 : i32
    %c0_i32_1 = arith.constant 0 : i32
    %c0_i32_2 = arith.constant 0 : i32
    return %c0_i32, %c0_i32_0, %c0_i32_1 : i32, i32, i32
  }
  func.func @transform_9(%arg0: i32) -> (i32, i32, i32) {
    %c0_i32 = arith.constant 0 : i32
    %c0_i32_0 = arith.constant 0 : i32
    %c0_i32_1 = arith.constant 0 : i32
    %c0_i32_2 = arith.constant 0 : i32
    return %c0_i32, %c0_i32_0, %c0_i32_1 : i32, i32, i32
  }
  func.func @transform_10(%arg0: i32) -> (i32, i32, i32) {
    %c0_i32 = arith.constant 0 : i32
    %c0_i32_0 = arith.constant 0 : i32
    %c0_i32_1 = arith.constant 0 : i32
    %c0_i32_2 = arith.constant 0 : i32
    return %c0_i32, %c0_i32_0, %c0_i32_1 : i32, i32, i32
  }
  func.func @transform_11(%arg0: i32) -> (i32, i32, i32) {
    %c0_i32 = arith.constant 0 : i32
    %c0_i32_0 = arith.constant 0 : i32
    %c0_i32_1 = arith.constant 0 : i32
    %c0_i32_2 = arith.constant 0 : i32
    return %c0_i32, %c0_i32_0, %c0_i32_1 : i32, i32, i32
  }
  func.func @transform_12(%arg0: i32) -> (i32, i32, i32) {
    %c0_i32 = arith.constant 0 : i32
    %c0_i32_0 = arith.constant 0 : i32
    %c0_i32_1 = arith.constant 0 : i32
    %c0_i32_2 = arith.constant 0 : i32
    return %c0_i32, %c0_i32_0, %c0_i32_1 : i32, i32, i32
  }
  func.func @transform_13(%arg0: i32) -> (i32, i32, i32) {
    %c0_i32 = arith.constant 0 : i32
    %c0_i32_0 = arith.constant 0 : i32
    %c0_i32_1 = arith.constant 0 : i32
    %c0_i32_2 = arith.constant 0 : i32
    return %c0_i32, %c0_i32_0, %c0_i32_1 : i32, i32, i32
  }
  func.func @transform_14(%arg0: i32) -> (i32, i32, i32) {
    %c0_i32 = arith.constant 0 : i32
    %c0_i32_0 = arith.constant 0 : i32
    %c0_i32_1 = arith.constant 0 : i32
    %c0_i32_2 = arith.constant 0 : i32
    return %c0_i32, %c0_i32_0, %c0_i32_1 : i32, i32, i32
  }
  func.func @transform_15(%arg0: i32) -> (i32, i32, i32) {
    %c0_i32 = arith.constant 0 : i32
    %c0_i32_0 = arith.constant 0 : i32
    %c0_i32_1 = arith.constant 0 : i32
    %c0_i32_2 = arith.constant 0 : i32
    return %c0_i32, %c0_i32_0, %c0_i32_1 : i32, i32, i32
  }
  func.func @transform_16(%arg0: i32) -> (i32, i32) {
    %c0_i32 = arith.constant 0 : i32
    %c0_i32_0 = arith.constant 0 : i32
    %c0_i32_1 = arith.constant 0 : i32
    return %c0_i32, %c0_i32_0 : i32, i32
  }
  func.func @transform_17(%arg0: i32) -> (i32, i32) {
    %c0_i32 = arith.constant 0 : i32
    %c0_i32_0 = arith.constant 0 : i32
    %c0_i32_1 = arith.constant 0 : i32
    return %c0_i32, %c0_i32_0 : i32, i32
  }
  func.func @transform_18(%arg0: i32) -> (i32, i32) {
    %c0_i32 = arith.constant 0 : i32
    %c0_i32_0 = arith.constant 0 : i32
    %c0_i32_1 = arith.constant 0 : i32
    return %c0_i32, %c0_i32_0 : i32, i32
  }
  func.func @transform_19(%arg0: i32) -> (i32, i32) {
    %c0_i32 = arith.constant 0 : i32
    %c0_i32_0 = arith.constant 0 : i32
    %c0_i32_1 = arith.constant 0 : i32
    return %c0_i32, %c0_i32_0 : i32, i32
  }
  func.func @transform_20(%arg0: i32) -> (i32, i32, i32) {
    %c0_i32 = arith.constant 0 : i32
    %c0_i32_0 = arith.constant 0 : i32
    %c0_i32_1 = arith.constant 0 : i32
    return %arg0, %c0_i32, %c0_i32_0 : i32, i32, i32
  }
}

</mosaic_0001>

<bundles_post_ra>
// kernel: time_series_transformer.1
= control target key start
LH: loop header
LB: loop body
LE: loop exit
PB: predicated region body
PF: predicated region fallthrough
CT: control target
= control target key end

     0   :  { %s3098_s23 = smov 0   ;;  %s3492_s0 = inlined_call_operand.vmem [shape: f32[2,8,4], index: 0, kind: input, shape index: {}]   ;;  %s3493_s1 = inlined_call_operand.vmem [shape: f32[8,32], index: 1, kind: input, shape index: {}]   ;;  %s3494_s2 = inlined_call_operand.vmem [shape: bf16[4,32], index: 2, kind: input, shape index: {}]   ;;  %s3495_s3 = inlined_call_operand.vmem [shape: f32[1,32], index: 3, kind: input, shape index: {}]   ;;  %s3496_s4 = inlined_call_operand.vmem [shape: bf16[2,32,96], index: 4, kind: input, shape index: {}]   ;;  %s3497_s5 = inlined_call_operand.vmem [shape: f32[2,1,96], index: 5, kind: input, shape index: {}]   ;;  %s3498_s6 = inlined_call_operand.vmem [shape: bf16[2,32,32], index: 6, kind: input, shape index: {}]   ;;  %s3499_s7 = inlined_call_operand.vmem [shape: f32[2,1,32], index: 7, kind: input, shape index: {}]   ;;  %s3500_s8 = inlined_call_operand.vmem [shape: f32[2,1,32], index: 8, kind: input, shape index: {}]   ;;  %s3501_s9 = inlined_call_operand.vmem [shape: f32[2,1,32], index: 9, kind: input, shape index: {}]   ;;  %s3502_s10 = inlined_call_operand.vmem [shape: bf16[2,32,64], index: 10, kind: input, shape index: {}]   ;;  %s3503_s11 = inlined_call_operand.vmem [shape: f32[2,1,64], index: 11, kind: input, shape index: {}]   ;;  %s3504_s12 = inlined_call_operand.vmem [shape: bf16[2,64,32], index: 12, kind: input, shape index: {}]   ;;  %s3505_s13 = inlined_call_operand.vmem [shape: f32[2,1,32], index: 13, kind: input, shape index: {}]   ;;  %s3506_s14 = inlined_call_operand.vmem [shape: f32[2,1,32], index: 14, kind: input, shape index: {}]   ;;  %s3507_s15 = inlined_call_operand.vmem [shape: f32[2,1,32], index: 15, kind: input, shape index: {}]   ;;  %s3508_s16 = inlined_call_operand.vmem [shape: bf16[32,64], index: 16, kind: input, shape index: {}]   ;;  %s3509_s17 = inlined_call_operand.vmem [shape: f32[1,64], index: 17, kind: input, shape index: {}]   ;;  %s3510_s18 = inlined_call_operand.vmem [shape: bf16[64,1], index: 18, kind: input, shape index: {}]   ;;  %s3511_s19 = inlined_call_operand.<no memory space> [shape: f32[1,1], index: 19, kind: input, shape index: {}]   ;;  %s3512_s20 = inlined_call_operand.vmem [shape: f32[2,1,1], index: 20, kind: output, shape index: {}]  }
   0x1   :  { %3523 = sst [smem:[#allocation3_spill]] %s3492_s0  ;;  %v25_v0 = vstv %s3511_s19 }
   0x2   :  { %3524 = sst [smem:[#allocation4_spill]] %s3493_s1  ;;  %26 = vst [vmem:[#allocation2] sm:$0x1] %v25_v0 }
   0x3   :  { %3525 = sst [smem:[#allocation5_spill]] %s3494_s2 }
   0x4   :  { %3526 = sst [smem:[#allocation6_spill]] %s3495_s3 }
   0x5   :  { %3527 = sst [smem:[#allocation7_spill]] %s3496_s4 }
   0x6 LB: > { %s2506_s24 = sadd.s32 4294967295, %s2972_s23   ;;  %p2510_p0 = scmp.ge.s32.totalorder %s2972_s23, 1  ;;  %s2972_s23 = sphi %s3098_s23, %s32_s23  }
   0x7   : > { %p563_p1 = scmp.lt.s32.totalorder %s2972_s23, 3 }
   0x9   : > { %p564_p2 = pnand %p2510_p0, %p563_p1 }
   0xa   : > { %s3528_s3 = sld [smem:[#allocation5_spill]] (!%p564_p2)  ;;  %p618_p3 = scmp.lt.s32.totalorder (!%p564_p2), %s2506_s24, 1 }
   0xb   : > { %567 = sbr.rel (%p564_p2) target bundleno = 5453 (0x154d), region = 100  ;;  %s3529_s28 = sld [smem:[#allocation3_spill]] (!%p564_p2) }
   0xc   : > { %s3530_s0 = sld [smem:[#allocation7_spill]] (!%p564_p2)  ;;  %s2977_s29 = smov (!%p564_p2), 96  }
   0xd   : > { %s3531_s25 = sld [smem:[#allocation6_spill]] (!%p564_p2)  ;;  %s3522_s30 = smov (!%p564_p2), 80  }
   0xe   : > { %s3532_s26 = sld [smem:[#allocation4_spill]] (!%p564_p2)  ;;  %s2979_s21 = smov (!%p564_p2), 88  }
   0xf   : > { %s3521_s1 = smov (!%p564_p2), 72   ;;  %s2981_s22 = smov (!%p564_p2), 112  }
  0x10   : > { %v627_v1 = vld [vmem:[%s3528_s3] sm:$0x3]  ;;  %vm640_vm0 = vcmask 1041408   ;;  %v2974_v2 = vmov 0.0   ;;  %vm2975_vm1 = vmmov 0   ;;  %s3543_s24 = smov (!%p618_p3, %s2506_s24), 1 }
  0x11   : > { %2682 = vmatprep.subr.bf16.mxu1 %v2974_v2  ;;  %v642_v3 = vsel %vm640_vm0, %v627_v1, 0  ;;  %2684 = vmatprep.mubr.msk.bf16.mxu1 %vm2975_vm1, %v2974_v2  ;;  %s2511_s19 = sshll.u32 %s3543_s24, 3  ;;  %vm636_vm2 = vcmask 31744   ;;  %vm711_vm3 = vcmask 261120   ;;  %v2514_v18 = vld [vmem:[%s3497_s5] ss:$0 sm:$0xff] }
  0x12   : > { %2683 = vmatpush3.bf16.msra.mxu1 %v642_v3  ;;  %2696 = vmatprep.subr.bf16.mxu0 %v2974_v2  ;;  %s621_s4 = scalar_lea.vmem %s3529_s28, %s2511_s19  ;;  %v2900_v6 = vld [vmem:[%s3530_s0 + $0x8] sm:$0xff]   ;;  %v2901_v7 = vld [vmem:[%s3530_s0] sm:$0xff]   ;;  %s2982_s2 = smov 104   ;;  %vm759_vm4 = vcmask 64512   ;;  %vm824_vm5 = vcmask 1043456   ;;  %vm1214_vm6 = vcmask 130048  }
  0x13   : > { %2688 = vmatprep.subr.bf16.mxu1 %v2974_v2  ;;  %2698 = vmatprep.mubr.msk.bf16.mxu0 %vm2975_vm1, %v2974_v2  ;;  %v626_v4 = vld [vmem:[%s621_s4] sm:$0xff]  ;;  %s2976_s4 = smov 120   ;;  %s3516_s3 = smov 64   ;;  %vm1216_vm7 = vcmask 195584   ;;  %vm1424_vm8 = vcmask 523264   ;;  %vm2457_vm9 = vcmask 0  }
  0x14   : > { %v628_v5 = vpack.c.bf16 %v626_v4, %v626_v4  ;;  %v2512_v8 = vld [vmem:[%s3531_s25] ss:$0 sm:$0xff]  ;;  %s3517_s25 = smov 56   ;;  %s3515_s19 = smov 40  }
  0x15   : > { %v685_v11 = vld [vmem:[%s3532_s26] sm:$0xff]  ;;  %s3514_s26 = smov 48   ;;  %s3520_s27 = smov 8  }
  0x16   : > { %2685 = vmatmul.mubr.msk.bf16.vlgmr.msra.gmra.mxu1 %vm636_vm2, %v628_v5 }
  0x17   : > { %2692 = vmatprep.mubr.msk.bf16.mxu1 %vm2975_vm1, %v2974_v2  ;;  %2689 = vmatpush3.bf16.msra.mxu1 %v2900_v6 }
  0x18   : > { %2690 = vmatprep.subr.bf16.mxu1 %v2974_v2 }
  0x1b   : > { %2691 = vmatpush3.bf16.msra.mxu1 %v2901_v7 }
  0x1c   : > { %2702 = vmatprep.subr.bf16.mxu1 %v2974_v2 }
  0xd6   : > { %v678_v9 = vpop.f32.mrf.mxu1 }
  0xd7   : > { %v679_v10 = vadd.f32 %v2512_v8, %v678_v9 }
  0xd8   : > { %v2686_v12 = vpop.f32.mrf.mxu1 }
  0xd9   : > { %v684_v13 = vmul.f32 5.656854, %v679_v10 }
  0xda   : > { %v681_v14 = vpop.f32.mrf.mxu1 }
  0xdb   : > { %v3138_v15 = vadd.f32 %v685_v11, %v684_v13 }
  0xdc   : > { %v2687_v16 = vpop.f32.mrf.mxu1 }
  0xdd   : > { %v691_v17 = vpack.c.bf16 %v3138_v15, %v3138_v15 }
  0xdf   : > { %2693 = vmatmul.mubr.msk.bf16.vlgmr.msra.gmra.mxu1 %vm711_vm3, %v691_v17 }
  0xe0   : > { %2704 = vmatprep.mubr.msk.bf16.mxu1 %vm2975_vm1, %v2974_v2 }
 0x19f   : > { %v749_v19 = vpop.f32.mrf.mxu1 }
 0x1a0   : > { %v750_v20 = vadd.f32 %v2514_v18, %v749_v19 }
 0x1a1   : > { %v2694_v21 = vpop.f32.mrf.mxu1 }
 0x1a2   : > { %v3148_v22 = vpack.c.bf16 %v750_v20, %v750_v20 }
 0x1a3   : > { %v752_v23 = vpop.f32.mrf.mxu1 }
 0x1a4   : > { %868 = vrot.lane.b32.xlu1 %v3148_v22, %s2976_s4  ;;  %757 = vrot.lane.b32.xlu0 %v3148_v22, %s2977_s29 }
 0x1a5   : > { %v2695_v24 = vpop.f32.mrf.mxu1 }
 0x1a8   : > { %981 = vrot.lane.b32.xlu1 %v3148_v22, %s3522_s30  ;;  %870 = vrot.lane.b32.xlu0 %v3148_v22, %s2979_s21  ;;  %s3540_s30 = smov 16  }
 0x1ac   : > { %1092 = vrot.lane.b32.xlu1 %v3148_v22, %s3521_s1  ;;  %979 = vrot.lane.b32.xlu0 %v3148_v22, %s2981_s22  ;;  %s3541_s1 = smov 24  }
 0x1b0   : > { %1090 = vrot.lane.b32.xlu0 %v3148_v22, %s2982_s2 }
 0x216   : > { %v758_v25 = vpop.permute.xlu0 %757  ;;  %v869_v28 = vpop.permute.xlu1 %868 }
 0x217   : > { %v764_v26 = vsel %vm759_vm4, %v758_v25, 0 }
 0x218   : > { %2697 = vmatpush3.bf16.xpose.msra.mxu0 %v764_v26 }
 0x219   : > { %2708 = vmatprep.subr.bf16.mxu0 %v2974_v2 }
 0x21a   : > { %v871_v27 = vpop.permute.xlu0 %870  ;;  %v982_v30 = vpop.permute.xlu1 %981 }
 0x21b   : > { %v876_v29 = vsel %vm759_vm4, %v871_v27, 0  ;;  %v987_v31 = vsel %vm759_vm4, %v982_v30, 0 }
 0x21e   : > { %v1093_v32 = vpop.permute.xlu1 %1092  ;;  %v980_v33 = vpop.permute.xlu0 %979 }
 0x21f   : > { %2699 = vmatmul.mubr.msk.bf16.vlgmr.msra.gmra.mxu0 %vm759_vm4, %v3148_v22  ;;  %v1098_v34 = vsel %vm759_vm4, %v1093_v32, 0 }
 0x220   : > { %2709 = vmatpush3.bf16.xpose.msra.mxu0 %v876_v29  ;;  %2710 = vmatprep.mubr.msk.bf16.mxu0 %vm2975_vm1, %v2974_v2 }
 0x221   : > { %2720 = vmatprep.subr.bf16.mxu0 %v2974_v2 }
 0x222   : > { %v1091_v35 = vpop.permute.xlu0 %1090 }
 0x227   : > { %2711 = vmatmul.mubr.msk.bf16.vlgmr.msra.gmra.mxu0 %vm759_vm4, %v869_v28 }
 0x228   : > { %2721 = vmatpush3.bf16.xpose.msra.mxu0 %v987_v31  ;;  %2722 = vmatprep.mubr.msk.bf16.mxu0 %vm2975_vm1, %v2974_v2 }
 0x229   : > { %2732 = vmatprep.subr.bf16.mxu0 %v2974_v2 }
 0x22f   : > { %2723 = vmatmul.mubr.msk.bf16.vlgmr.msra.gmra.mxu0 %vm759_vm4, %v980_v33 }
 0x230   : > { %2733 = vmatpush3.bf16.xpose.msra.mxu0 %v1098_v34  ;;  %2734 = vmatprep.mubr.msk.bf16.mxu0 %vm2975_vm1, %v2974_v2 }
 0x231   : > { %2744 = vmatprep.subr.bf16.mxu0 %v2974_v2 }
 0x237   : > { %2735 = vmatmul.mubr.msk.bf16.vlgmr.msra.gmra.mxu0 %vm759_vm4, %v1091_v35 }
 0x238   : > { %2748 = vmatprep.mubr.msk.bf16.mxu0 %vm2975_vm1, %v2974_v2 }
 0x2df   : > { %v800_v36 = vpop.f32.mrf.mxu0 }
 0x2e0   : > { %v806_v37 = vmul.f32 0.35355338, %v800_v36 }
 0x2e1   : > { %v2700_v38 = vpop.f32.mrf.mxu0 }
 0x2e2   : > { %v807_v39 = vsel %vm759_vm4, %v806_v37, -inf }
 0x2e3   : > { %808 = vmax.xlane.f32.xlu1 %v807_v39  ;;  %v803_v40 = vpop.f32.mrf.mxu0 }
 0x2e5   : > { %v2701_v41 = vpop.f32.mrf.mxu0 }
 0x2e7   : > { %v912_v42 = vpop.f32.mrf.mxu0 }
 0x2e8   : > { %v918_v43 = vmul.f32 0.35355338, %v912_v42 }
 0x2e9   : > { %v2712_v44 = vpop.f32.mrf.mxu0 }
 0x2ea   : > { %v919_v45 = vsel %vm759_vm4, %v918_v43, -inf }
 0x2eb   : > { %920 = vmax.xlane.f32.xlu0 %v919_v45  ;;  %v915_v46 = vpop.f32.mrf.mxu0 }
 0x2ed   : > { %v2713_v47 = vpop.f32.mrf.mxu0 }
 0x2ef   : > { %v1023_v48 = vpop.f32.mrf.mxu0 }
 0x2f0   : > { %v1029_v49 = vmul.f32 0.35355338, %v1023_v48 }
 0x2f1   : > { %v2724_v50 = vpop.f32.mrf.mxu0 }
 0x2f2   : > { %v1030_v51 = vsel %vm759_vm4, %v1029_v49, -inf  ;;  %v2902_v50 = vld [vmem:[%s3498_s6 + $0x8] sm:$0xff]  }
 0x2f3   : > { %1031 = vmax.xlane.f32.xlu0 %v1030_v51  ;;  %v1026_v52 = vpop.f32.mrf.mxu0  ;;  %2745 = vmatpush3.bf16.msra.mxu0 %v2902_v50  ;;  %v2903_v51 = vld [vmem:[%s3498_s6] sm:$0xff]  }
 0x2f4   : > { %2746 = vmatprep.subr.bf16.mxu0 %v2974_v2 }
 0x2f5   : > { %v2725_v53 = vpop.f32.mrf.mxu0 }
 0x2f7   : > { %v1134_v54 = vpop.f32.mrf.mxu0  ;;  %2747 = vmatpush3.bf16.msra.mxu0 %v2903_v51 }
 0x2f8   : > { %v1140_v55 = vmul.f32 0.35355338, %v1134_v54  ;;  %2760 = vmatprep.subr.bf16.mxu0 %v2974_v2 }
 0x2f9   : > { %v2736_v56 = vpop.f32.mrf.mxu0 }
 0x2fa   : > { %v1141_v57 = vsel %vm759_vm4, %v1140_v55, -inf }
 0x2fb   : > { %1142 = vmax.xlane.f32.xlu1 %v1141_v57  ;;  %v1137_v58 = vpop.f32.mrf.mxu0 }
 0x2fd   : > { %v2737_v59 = vpop.f32.mrf.mxu0 }
 0x36c   : > { %v809_v60 = vpop.xlane.xlu1 %808 }
 0x36d   : > { %v810_v61 = vsub.f32 %v806_v37, %v809_v60 }
 0x36f   : > { %v811_v62 = vmul.f32 1.442695, %v810_v61 }
 0x371   : > { %2926 = vpow2.f32 %v811_v62 }
 0x374   : > { %v921_v63 = vpop.xlane.xlu0 %920 }
 0x375   : > { %v922_v0 = vsub.f32 %v918_v43, %v921_v63 }
 0x377   : > { %v923_v1 = vmul.f32 1.442695, %v922_v0 }
 0x379   : > { %2928 = vpow2.f32 %v923_v1 }
 0x37c   : > { %v1032_v3 = vpop.xlane.xlu0 %1031 }
 0x37d   : > { %v1033_v4 = vsub.f32 %v1029_v49, %v1032_v3 }
 0x37e   : > { %v2927_v5 = vpop.eup %2926 }
 0x37f   : > { %v1034_v6 = vmul.f32 1.442695, %v1033_v4  ;;  %v813_v7 = vsel %vm759_vm4, %v2927_v5, 0.0  ;;  %v2526_v4 = vld [vmem:[%s3499_s7] ss:$0 sm:$0xff] }
 0x380   : > { %814 = vadd.xlane.f32.xlu0 %v813_v7 }
 0x381   : > { %2930 = vpow2.f32 %v1034_v6 }
 0x384   : > { %v1143_v12 = vpop.xlane.xlu1 %1142 }
 0x385   : > { %v1144_v13 = vsub.f32 %v1140_v55, %v1143_v12 }
 0x386   : > { %v2929_v8 = vpop.eup %2928 }
 0x387   : > { %v925_v9 = vsel %vm759_vm4, %v2929_v8, 0.0  ;;  %v1145_v14 = vmul.f32 1.442695, %v1144_v13 }
 0x388   : > { %926 = vadd.xlane.f32.xlu1 %v925_v9 }
 0x389   : > { %2932 = vpow2.f32 %v1145_v14 }
 0x38e   : > { %v2931_v10 = vpop.eup %2930 }
 0x38f   : > { %v1036_v11 = vsel %vm759_vm4, %v2931_v10, 0.0 }
 0x390   : > { %1037 = vadd.xlane.f32.xlu0 %v1036_v11 }
 0x396   : > { %v2933_v16 = vpop.eup %2932 }
 0x397   : > { %v1147_v17 = vsel %vm759_vm4, %v2933_v16, 0.0 }
 0x399   : > { %931 = vrot.lane.b32.xlu1 %v3148_v22, %s3517_s25  ;;  %s3519_s25 = smov 16  }
 0x3a6   : > { %819 = vrot.lane.b32.xlu0 %v3148_v22, %s3516_s3  ;;  %s3533_s3 = smov 80  }
 0x3aa   : > { %1153 = vrot.lane.b32.xlu0 %v3148_v22, %s3515_s19  ;;  %s3534_s19 = smov 72  }
 0x3bd   : > { %1148 = vadd.xlane.f32.xlu1 %v1147_v17 }
 0x3ce   : > { %1042 = vrot.lane.b32.xlu1 %v3148_v22, %s3514_s26  ;;  %s3518_s26 = smov 24  }
 0x409   : > { %v815_v18 = vpop.xlane.xlu0 %814 }
 0x40a   : > { %2934 = vrcp.f32 %v815_v18  ;;  %v2904_v18 = vld [vmem:[%s3502_s10 + $0x8] sm:$0xff]  }
 0x411   : > { %v927_v19 = vpop.xlane.xlu1 %926 }
 0x412   : > { %2936 = vrcp.f32 %v927_v19  ;;  %v2906_v19 = vld [vmem:[%s3504_s12 + $0x18] sm:$0xff]  }
 0x415   : > { %v932_v26 = vpop.permute.xlu1 %931 }
 0x416   : > { %v937_v29 = vsel %vm824_vm5, %v932_v26, 0  ;;  %v2530_v26 = vld [vmem:[%s3500_s8] ss:$0 sm:$0xff] }
 0x417   : > { %v2935_v20 = vpop.eup %2934 }
 0x418   : > { %v817_v23 = vmul.f32 %v2935_v20, %v2927_v5  ;;  %v2907_v20 = vld [vmem:[%s3504_s12 + $0x10] sm:$0xff]  }
 0x419   : > { %v1038_v21 = vpop.xlane.xlu0 %1037 }
 0x41a   : > { %v818_v27 = vpack.c.bf16 %v817_v23, %v817_v23  ;;  %2938 = vrcp.f32 %v1038_v21 }
 0x41d   : > { %v820_v24 = vpop.permute.xlu0 %819 }
 0x41e   : > { %v826_v25 = vsel %vm824_vm5, %v820_v24, 0 }
 0x41f   : > { %2703 = vmatpush3.bf16.msra.mxu1 %v826_v25  ;;  %v2937_v28 = vpop.eup %2936 }
 0x420   : > { %2714 = vmatprep.subr.bf16.mxu1 %v2974_v2  ;;  %v929_v22 = vmul.f32 %v2937_v28, %v2929_v8  ;;  %v2531_v28 = vld [vmem:[%s3501_s9] ss:$0 sm:$0xff] }
 0x421   : > { %v1154_v36 = vpop.permute.xlu0 %1153 }
 0x422   : > { %2705 = vmatmul.mubr.msk.bf16.vlgmr.msra.gmra.mxu1 %vm759_vm4, %v818_v27  ;;  %v930_v30 = vpack.c.bf16 %v929_v22, %v929_v22  ;;  %v1159_v38 = vsel %vm824_vm5, %v1154_v36, 0 }
 0x423   : > { %2715 = vmatpush3.bf16.msra.mxu1 %v937_v29  ;;  %2716 = vmatprep.mubr.msk.bf16.mxu1 %vm2975_vm1, %v2974_v2 }
 0x424   : > { %2726 = vmatprep.subr.bf16.mxu1 %v2974_v2 }
 0x427   : > { %v2939_v31 = vpop.eup %2938 }
 0x428   : > { %v1040_v33 = vmul.f32 %v2939_v31, %v2931_v10  ;;  %v2908_v31 = vld [vmem:[%s3504_s12 + $0x8] sm:$0xff]  }
 0x42a   : > { %2717 = vmatmul.mubr.msk.bf16.vlgmr.msra.gmra.mxu1 %vm759_vm4, %v930_v30  ;;  %v1041_v37 = vpack.c.bf16 %v1040_v33, %v1040_v33  ;;  %v2532_v33 = vld [vmem:[%s3503_s11] ss:$0 sm:$0xff] }
 0x42b   : > { %2728 = vmatprep.mubr.msk.bf16.mxu1 %vm2975_vm1, %v2974_v2 }
 0x446   : > { %v1149_v32 = vpop.xlane.xlu1 %1148 }
 0x447   : > { %2940 = vrcp.f32 %v1149_v32  ;;  %v2909_v32 = vld [vmem:[%s3504_s12] sm:$0xff]  }
 0x44a   : > { %v1043_v34 = vpop.permute.xlu1 %1042 }
 0x44b   : > { %v1048_v35 = vsel %vm824_vm5, %v1043_v34, 0 }
 0x44c   : > { %2727 = vmatpush3.bf16.msra.mxu1 %v1048_v35 }
 0x44d   : > { %2738 = vmatprep.subr.bf16.mxu1 %v2974_v2 }
 0x44f   : > { %2729 = vmatmul.mubr.msk.bf16.vlgmr.msra.gmra.mxu1 %vm759_vm4, %v1041_v37 }
 0x450   : > { %2739 = vmatpush3.bf16.msra.mxu1 %v1159_v38  ;;  %2740 = vmatprep.mubr.msk.bf16.mxu1 %vm2975_vm1, %v2974_v2 }
 0x451   : > { %2752 = vmatprep.subr.bf16.mxu1 %v2974_v2 }
 0x454   : > { %v2941_v39 = vpop.eup %2940 }
 0x455   : > { %v1151_v40 = vmul.f32 %v2941_v39, %v2933_v16 }
 0x457   : > { %v1152_v41 = vpack.c.bf16 %v1151_v40, %v1151_v40 }
 0x459   : > { %2741 = vmatmul.mubr.msk.bf16.vlgmr.msra.gmra.mxu1 %vm759_vm4, %v1152_v41  ;;  %v2536_v41 = vld [vmem:[%s3505_s13] ss:$0 sm:$0xff] }
 0x45a   : > { %2756 = vmatprep.mubr.msk.bf16.mxu1 %vm2975_vm1, %v2974_v2  ;;  %2753 = vmatpush3.bf16.msra.mxu1 %v2904_v18 }
 0x45b   : > { %2754 = vmatprep.subr.bf16.mxu1 %v2974_v2 }
 0x4e2   : > { %v862_v42 = vpop.f32.mrf.mxu1 }
 0x4e4   : > { %v2706_v43 = vpop.f32.mrf.mxu1 }
 0x4e6   : > { %v865_v44 = vpop.f32.mrf.mxu1 }
 0x4e8   : > { %v2707_v45 = vpop.f32.mrf.mxu1 }
 0x4ea   : > { %v973_v46 = vpop.f32.mrf.mxu1 }
 0x4eb   : > { %1202 = vrot.lane.b32.xlu1 %v973_v46, %s3520_s27 }
 0x4ec   : > { %v2718_v47 = vpop.f32.mrf.mxu1 }
 0x4ee   : > { %v976_v48 = vpop.f32.mrf.mxu1 }
 0x4f0   : > { %v2719_v49 = vpop.f32.mrf.mxu1 }
 0x50f   : > { %v1084_v52 = vpop.f32.mrf.mxu1 }
 0x510   : > { %1206 = vrot.lane.b32.xlu0 %v1084_v52, %s3519_s25 }
 0x511   : > { %v2730_v53 = vpop.f32.mrf.mxu1 }
 0x513   : > { %v1087_v54 = vpop.f32.mrf.mxu1 }
 0x514   : > { %v2910_v54 = vld [vmem:[%s3530_s0 + $0x18] sm:$0xff]  }
 0x515   : > { %v2731_v55 = vpop.f32.mrf.mxu1 }
 0x516   : > { %v2911_v55 = vld [vmem:[%s3530_s0 + $0x10] sm:$0xff]  }
 0x519   : > { %v1195_v56 = vpop.f32.mrf.mxu1 }
 0x51a   : > { %1210 = vrot.lane.b32.xlu1 %v1195_v56, %s3518_s26 }
 0x51b   : > { %v2742_v57 = vpop.f32.mrf.mxu1 }
 0x51d   : > { %v1198_v58 = vpop.f32.mrf.mxu1 }
 0x51f   : > { %v2743_v59 = vpop.f32.mrf.mxu1 }
 0x55d   : > { %v1203_v60 = vpop.permute.xlu1 %1202 }
 0x55e   : > { %v1213_v62 = vsel %vm759_vm4, %v862_v42, %v1203_v60  ;;  %v2542_v60 = vld [vmem:[%s3506_s14] ss:$0 sm:$0xff] }
 0x582   : > { %v1207_v61 = vpop.permute.xlu0 %1206 }
 0x583   : > { %v1215_v63 = vsel %vm1214_vm6, %v1213_v62, %v1207_v61  ;;  %v2543_v62 = vld [vmem:[%s3507_s15] ss:$0 sm:$0xff] }
 0x58c   : > { %v1211_v0 = vpop.permute.xlu1 %1210 }
 0x58d   : > { %v1217_v1 = vsel %vm1216_vm7, %v1215_v63, %v1211_v0 }
 0x58e   : > { %v1222_v3 = vpack.c.bf16 %v1217_v1, %v1217_v1 }
 0x590   : > { %2749 = vmatmul.mubr.msk.bf16.vlgmr.msra.gmra.mxu0 %vm711_vm3, %v1222_v3  ;;  %v2549_v3 = vld [vmem:[%s3497_s5 + $0x1] ss:$0 sm:$0xff] }
 0x591   : > { %2768 = vmatprep.mubr.msk.bf16.mxu0 %vm2975_vm1, %v2974_v2  ;;  %2761 = vmatpush3.bf16.msra.mxu0 %v2906_v19 }
 0x592   : > { %2762 = vmatprep.subr.bf16.mxu0 %v2974_v2 }
 0x595   : > { %2763 = vmatpush3.bf16.msra.mxu0 %v2907_v20 }
 0x596   : > { %2764 = vmatprep.subr.bf16.mxu0 %v2974_v2 }
 0x599   : > { %2765 = vmatpush3.bf16.msra.mxu0 %v2908_v31 }
 0x59a   : > { %2766 = vmatprep.subr.bf16.mxu0 %v2974_v2 }
 0x59d   : > { %2767 = vmatpush3.bf16.msra.mxu0 %v2909_v32 }
 0x59e   : > { %2786 = vmatprep.subr.bf16.mxu0 %v2974_v2 }
 0x650   : > { %v1279_v5 = vpop.f32.mrf.mxu0 }
 0x651   : > { %v1280_v6 = vadd.f32 %v2526_v4, %v1279_v5 }
 0x652   : > { %v2750_v7 = vpop.f32.mrf.mxu0 }
 0x653   : > { %v1287_v8 = vadd.f32 %v1280_v6, %v3138_v15  ;;  %v2905_v15 = vld [vmem:[%s3502_s10] sm:$0xff]  }
 0x654   : > { %v1282_v9 = vpop.f32.mrf.mxu0  ;;  %2755 = vmatpush3.bf16.msra.mxu1 %v2905_v15 }
 0x655   : > { %v1288_v10 = vsel %vm711_vm3, %v1287_v8, 0.0  ;;  %2772 = vmatprep.subr.bf16.mxu1 %v2974_v2 }
 0x656   : > { %1289 = vadd.xlane.f32.xlu0 %v1288_v10  ;;  %v2751_v11 = vpop.f32.mrf.mxu0 }
 0x6df   : > { %v1290_v12 = vpop.xlane.xlu0 %1289 }
 0x6e0   : > { %v1292_v13 = vmul.f32 0.03125, %v1290_v12 }
 0x6e2   : > { %v1293_v14 = vsub.f32 %v1287_v8, %v1292_v13 }
 0x6e4   : > { %v1294_v16 = vmul.f32 %v1293_v14, %v1293_v14 }
 0x6e6   : > { %v1295_v17 = vsel %vm711_vm3, %v1294_v16, 0.0 }
 0x6e7   : > { %1296 = vadd.xlane.f32.xlu1 %v1295_v17 }
 0x770   : > { %v1297_v21 = vpop.xlane.xlu1 %1296 }
 0x771   : > { %v1298_v23 = vmul.f32 0.03125, %v1297_v21 }
 0x773   : > { %v1299_v24 = vadd.f32 1e-05, %v1298_v23 }
 0x775   : > { %2942 = vrsqrt.f32 %v1299_v24 }
 0x782   : > { %v2943_v25 = vpop.eup %2942 }
 0x783   : > { %v1301_v27 = vmul.f32 %v2943_v25, %v1293_v14 }
 0x785   : > { %v1308_v29 = vmul.f32 %v2530_v26, %v1301_v27 }
 0x787   : > { %v1315_v22 = vadd.f32 %v2531_v28, %v1308_v29 }
 0x789   : > { %v1320_v30 = vpack.c.bf16 %v1315_v22, %v1315_v22 }
 0x78b   : > { %2757 = vmatmul.mubr.msk.bf16.vlgmr.msra.gmra.mxu1 %vm711_vm3, %v1320_v30 }
 0x78c   : > { %2776 = vmatprep.mubr.msk.bf16.mxu1 %vm2975_vm1, %v2974_v2  ;;  %2773 = vmatpush3.bf16.msra.mxu1 %v2910_v54 }
 0x78d   : > { %2774 = vmatprep.subr.bf16.mxu1 %v2974_v2 }
 0x790   : > { %2775 = vmatpush3.bf16.msra.mxu1 %v2911_v55 }
 0x791   : > { %2780 = vmatprep.subr.bf16.mxu1 %v2974_v2 }
 0x84b   : > { %v1377_v34 = vpop.f32.mrf.mxu1 }
 0x84c   : > { %v1378_v35 = vadd.f32 %v2532_v33, %v1377_v34 }
 0x84d   : > { %v2758_v36 = vpop.f32.mrf.mxu1 }
 0x84e   : > { %v1383_v37 = vmax.f32 %v1378_v35, 0.0 }
 0x84f   : > { %v1380_v38 = vpop.f32.mrf.mxu1 }
 0x850   : > { %v1392_v39 = vpack.c.bf16 %v1383_v37, %v1383_v37 }
 0x851   : > { %v2759_v40 = vpop.f32.mrf.mxu1 }
 0x852   : > { %2769 = vmatmul.mubr.msk.bf16.vlgmr.msra.gmra.mxu0 %vm1424_vm8, %v1392_v39 }
 0x853   : > { %2788 = vmatprep.mubr.msk.bf16.mxu0 %vm2975_vm1, %v2974_v2 }
 0x912   : > { %v1462_v42 = vpop.f32.mrf.mxu0 }
 0x913   : > { %v1463_v43 = vadd.f32 %v2536_v41, %v1462_v42 }
 0x914   : > { %v2770_v44 = vpop.f32.mrf.mxu0 }
 0x915   : > { %v1470_v45 = vadd.f32 %v1463_v43, %v1315_v22 }
 0x916   : > { %v1465_v46 = vpop.f32.mrf.mxu0 }
 0x917   : > { %v1471_v47 = vsel %vm711_vm3, %v1470_v45, 0.0 }
 0x918   : > { %1472 = vadd.xlane.f32.xlu0 %v1471_v47  ;;  %v2771_v48 = vpop.f32.mrf.mxu0 }
 0x9a1   : > { %v1473_v49 = vpop.xlane.xlu0 %1472 }
 0x9a2   : > { %v1474_v50 = vmul.f32 0.03125, %v1473_v49 }
 0x9a4   : > { %v1475_v51 = vsub.f32 %v1470_v45, %v1474_v50 }
 0x9a6   : > { %v1476_v52 = vmul.f32 %v1475_v51, %v1475_v51 }
 0x9a8   : > { %v1477_v53 = vsel %vm711_vm3, %v1476_v52, 0.0 }
 0x9a9   : > { %1478 = vadd.xlane.f32.xlu0 %v1477_v53 }
 0xa32   : > { %v1479_v56 = vpop.xlane.xlu0 %1478 }
 0xa33   : > { %v1480_v57 = vmul.f32 0.03125, %v1479_v56 }
 0xa35   : > { %v1481_v58 = vadd.f32 1e-05, %v1480_v57 }
 0xa37   : > { %2944 = vrsqrt.f32 %v1481_v58 }
 0xa44   : > { %v2945_v59 = vpop.eup %2944 }
 0xa45   : > { %v1483_v61 = vmul.f32 %v2945_v59, %v1475_v51 }
 0xa47   : > { %v1490_v63 = vmul.f32 %v2542_v60, %v1483_v61 }
 0xa49   : > { %v3302_v0 = vadd.f32 %v2543_v62, %v1490_v63 }
 0xa4b   : > { %v1503_v1 = vpack.c.bf16 %v3302_v0, %v3302_v0 }
 0xa4d   : > { %2777 = vmatmul.mubr.msk.bf16.vlgmr.msra.gmra.mxu1 %vm711_vm3, %v1503_v1 }
 0xa4e   : > { %2782 = vmatprep.mubr.msk.bf16.mxu1 %vm2975_vm1, %v2974_v2 }
 0xb0d   : > { %v1561_v4 = vpop.f32.mrf.mxu1 }
 0xb0e   : > { %v1562_v5 = vadd.f32 %v2549_v3, %v1561_v4 }
 0xb0f   : > { %v2778_v6 = vpop.f32.mrf.mxu1 }
 0xb10   : > { %v3312_v7 = vpack.c.bf16 %v1562_v5, %v1562_v5 }
 0xb11   : > { %v1564_v8 = vpop.f32.mrf.mxu1 }
 0xb12   : > { %1680 = vrot.lane.b32.xlu0 %v3312_v7, %s2979_s21  ;;  %1569 = vrot.lane.b32.xlu1 %v3312_v7, %s2977_s29  ;;  %s3536_s29 = smov 64   ;;  %s3537_s21 = smov 40  }
 0xb13   : > { %v2779_v9 = vpop.f32.mrf.mxu1 }
 0xb16   : > { %1789 = vrot.lane.b32.xlu0 %v3312_v7, %s2981_s22  ;;  %1678 = vrot.lane.b32.xlu1 %v3312_v7, %s2976_s4  ;;  %s3535_s4 = smov 56   ;;  %s3538_s22 = smov 48  }
 0xb1a   : > { %1900 = vrot.lane.b32.xlu0 %v3312_v7, %s2982_s2  ;;  %1791 = vrot.lane.b32.xlu1 %v3312_v7, %s3533_s3  ;;  %s3539_s2 = smov 8  }
 0xb1e   : > { %1902 = vrot.lane.b32.xlu1 %v3312_v7, %s3534_s19 }
 0xb84   : > { %v1570_v10 = vpop.permute.xlu1 %1569  ;;  %v1681_v12 = vpop.permute.xlu0 %1680 }
 0xb85   : > { %v1575_v11 = vsel %vm759_vm4, %v1570_v10, 0  ;;  %v1686_v14 = vsel %vm759_vm4, %v1681_v12, 0 }
 0xb86   : > { %2781 = vmatpush3.bf16.xpose.msra.mxu1 %v1575_v11 }
 0xb87   : > { %2792 = vmatprep.subr.bf16.mxu1 %v2974_v2 }
 0xb88   : > { %v1679_v13 = vpop.permute.xlu1 %1678  ;;  %v1790_v15 = vpop.permute.xlu0 %1789 }
 0xb8c   : > { %v1792_v16 = vpop.permute.xlu1 %1791  ;;  %v1901_v20 = vpop.permute.xlu0 %1900 }
 0xb8d   : > { %2783 = vmatmul.mubr.msk.bf16.vlgmr.msra.gmra.mxu1 %vm759_vm4, %v3312_v7  ;;  %v1797_v17 = vsel %vm759_vm4, %v1792_v16, 0 }
 0xb8e   : > { %2793 = vmatpush3.bf16.xpose.msra.mxu1 %v1686_v14  ;;  %2794 = vmatprep.mubr.msk.bf16.mxu1 %vm2975_vm1, %v2974_v2 }
 0xb8f   : > { %2804 = vmatprep.subr.bf16.mxu1 %v2974_v2 }
 0xb90   : > { %v1903_v18 = vpop.permute.xlu1 %1902 }
 0xb91   : > { %v1908_v19 = vsel %vm759_vm4, %v1903_v18, 0 }
 0xb95   : > { %2795 = vmatmul.mubr.msk.bf16.vlgmr.msra.gmra.mxu1 %vm759_vm4, %v1679_v13 }
 0xb96   : > { %2805 = vmatpush3.bf16.xpose.msra.mxu1 %v1797_v17  ;;  %2806 = vmatprep.mubr.msk.bf16.mxu1 %vm2975_vm1, %v2974_v2 }
 0xb97   : > { %2816 = vmatprep.subr.bf16.mxu1 %v2974_v2 }
 0xb9d   : > { %2807 = vmatmul.mubr.msk.bf16.vlgmr.msra.gmra.mxu1 %vm759_vm4, %v1790_v15 }
 0xb9e   : > { %2817 = vmatpush3.bf16.xpose.msra.mxu1 %v1908_v19  ;;  %2818 = vmatprep.mubr.msk.bf16.mxu1 %vm2975_vm1, %v2974_v2 }
 0xb9f   : > { %2828 = vmatprep.subr.bf16.mxu1 %v2974_v2 }
 0xba5   : > { %2819 = vmatmul.mubr.msk.bf16.vlgmr.msra.gmra.mxu1 %vm759_vm4, %v1901_v20 }
 0xba6   : > { %2832 = vmatprep.mubr.msk.bf16.mxu1 %vm2975_vm1, %v2974_v2 }
 0xc4d   : > { %v1611_v21 = vpop.f32.mrf.mxu1 }
 0xc4e   : > { %v1617_v23 = vmul.f32 0.35355338, %v1611_v21 }
 0xc4f   : > { %v2784_v24 = vpop.f32.mrf.mxu1 }
 0xc50   : > { %v1618_v25 = vsel %vm759_vm4, %v1617_v23, -inf }
 0xc51   : > { %1619 = vmax.xlane.f32.xlu1 %v1618_v25  ;;  %v1614_v26 = vpop.f32.mrf.mxu1 }
 0xc53   : > { %v2785_v27 = vpop.f32.mrf.mxu1 }
 0xc55   : > { %v1722_v28 = vpop.f32.mrf.mxu1 }
 0xc56   : > { %v1728_v29 = vmul.f32 0.35355338, %v1722_v28 }
 0xc57   : > { %v2796_v22 = vpop.f32.mrf.mxu1 }
 0xc58   : > { %v1729_v30 = vsel %vm759_vm4, %v1728_v29, -inf }
 0xc59   : > { %1730 = vmax.xlane.f32.xlu0 %v1729_v30  ;;  %v1725_v31 = vpop.f32.mrf.mxu1 }
 0xc5b   : > { %v2797_v32 = vpop.f32.mrf.mxu1 }
 0xc5d   : > { %v1833_v33 = vpop.f32.mrf.mxu1 }
 0xc5e   : > { %v1839_v34 = vmul.f32 0.35355338, %v1833_v33 }
 0xc5f   : > { %v2808_v35 = vpop.f32.mrf.mxu1 }
 0xc60   : > { %v1840_v36 = vsel %vm759_vm4, %v1839_v34, -inf  ;;  %v2912_v35 = vld [vmem:[%s3498_s6 + $0x18] sm:$0xff]  }
 0xc61   : > { %1841 = vmax.xlane.f32.xlu0 %v1840_v36  ;;  %v1836_v37 = vpop.f32.mrf.mxu1  ;;  %2829 = vmatpush3.bf16.msra.mxu1 %v2912_v35  ;;  %v2913_v36 = vld [vmem:[%s3498_s6 + $0x10] sm:$0xff]  }
 0xc62   : > { %2830 = vmatprep.subr.bf16.mxu1 %v2974_v2 }
 0xc63   : > { %v2809_v38 = vpop.f32.mrf.mxu1 }
 0xc65   : > { %v1944_v39 = vpop.f32.mrf.mxu1  ;;  %2831 = vmatpush3.bf16.msra.mxu1 %v2913_v36 }
 0xc66   : > { %v1950_v40 = vmul.f32 0.35355338, %v1944_v39  ;;  %2844 = vmatprep.subr.bf16.mxu1 %v2974_v2 }
 0xc67   : > { %v2820_v41 = vpop.f32.mrf.mxu1 }
 0xc68   : > { %v1951_v42 = vsel %vm759_vm4, %v1950_v40, -inf }
 0xc69   : > { %1952 = vmax.xlane.f32.xlu1 %v1951_v42  ;;  %v1947_v43 = vpop.f32.mrf.mxu1 }
 0xc6b   : > { %v2821_v44 = vpop.f32.mrf.mxu1 }
 0xcda   : > { %v1620_v45 = vpop.xlane.xlu1 %1619 }
 0xcdb   : > { %v1621_v46 = vsub.f32 %v1617_v23, %v1620_v45 }
 0xcdd   : > { %v1622_v47 = vmul.f32 1.442695, %v1621_v46 }
 0xcdf   : > { %2946 = vpow2.f32 %v1622_v47 }
 0xce2   : > { %v1731_v48 = vpop.xlane.xlu0 %1730 }
 0xce3   : > { %v1732_v49 = vsub.f32 %v1728_v29, %v1731_v48 }
 0xce5   : > { %v1733_v50 = vmul.f32 1.442695, %v1732_v49 }
 0xce7   : > { %2948 = vpow2.f32 %v1733_v50 }
 0xcea   : > { %v1842_v51 = vpop.xlane.xlu0 %1841 }
 0xceb   : > { %v1843_v52 = vsub.f32 %v1839_v34, %v1842_v51 }
 0xcec   : > { %v2947_v53 = vpop.eup %2946 }
 0xced   : > { %v1844_v54 = vmul.f32 1.442695, %v1843_v52  ;;  %v1624_v55 = vsel %vm759_vm4, %v2947_v53, 0.0  ;;  %v2566_v52 = vld [vmem:[%s3499_s7 + $0x1] ss:$0 sm:$0xff] }
 0xcee   : > { %1625 = vadd.xlane.f32.xlu0 %v1624_v55 }
 0xcef   : > { %2950 = vpow2.f32 %v1844_v54 }
 0xcf2   : > { %v1953_v60 = vpop.xlane.xlu1 %1952 }
 0xcf3   : > { %v1954_v61 = vsub.f32 %v1950_v40, %v1953_v60 }
 0xcf4   : > { %v2949_v56 = vpop.eup %2948 }
 0xcf5   : > { %v1735_v57 = vsel %vm759_vm4, %v2949_v56, 0.0  ;;  %v1955_v62 = vmul.f32 1.442695, %v1954_v61 }
 0xcf6   : > { %1736 = vadd.xlane.f32.xlu1 %v1735_v57 }
 0xcf7   : > { %2952 = vpow2.f32 %v1955_v62 }
 0xcfc   : > { %v2951_v58 = vpop.eup %2950 }
 0xcfd   : > { %v1846_v59 = vsel %vm759_vm4, %v2951_v58, 0.0 }
 0xcfe   : > { %1847 = vadd.xlane.f32.xlu0 %v1846_v59 }
 0xd04   : > { %v2953_v63 = vpop.eup %2952 }
 0xd05   : > { %v1957_v1 = vsel %vm759_vm4, %v2953_v63, 0.0 }
 0xd07   : > { %1741 = vrot.lane.b32.xlu1 %v3312_v7, %s3535_s4 }
 0xd14   : > { %1630 = vrot.lane.b32.xlu0 %v3312_v7, %s3536_s29  ;;  %s624_s29 = scalar_lea.vmem %s3512_s20, %s3543_s24 }
 0xd18   : > { %1963 = vrot.lane.b32.xlu0 %v3312_v7, %s3537_s21 }
 0xd2b   : > { %1958 = vadd.xlane.f32.xlu1 %v1957_v1 }
 0xd3c   : > { %1852 = vrot.lane.b32.xlu1 %v3312_v7, %s3538_s22 }
 0xd77   : > { %v1626_v3 = vpop.xlane.xlu0 %1625 }
 0xd78   : > { %2954 = vrcp.f32 %v1626_v3  ;;  %v2914_v3 = vld [vmem:[%s3502_s10 + $0x18] sm:$0xff]  }
 0xd7f   : > { %v1737_v4 = vpop.xlane.xlu1 %1736 }
 0xd80   : > { %2956 = vrcp.f32 %v1737_v4  ;;  %v2916_v4 = vld [vmem:[%s3504_s12 + $0x38] sm:$0xff]  }
 0xd83   : > { %v1742_v11 = vpop.permute.xlu1 %1741 }
 0xd84   : > { %v1747_v14 = vsel %vm824_vm5, %v1742_v11, 0  ;;  %v2572_v11 = vld [vmem:[%s3500_s8 + $0x1] ss:$0 sm:$0xff] }
 0xd85   : > { %v2955_v5 = vpop.eup %2954 }
 0xd86   : > { %v1628_v8 = vmul.f32 %v2955_v5, %v2947_v53  ;;  %v2917_v5 = vld [vmem:[%s3504_s12 + $0x30] sm:$0xff]  }
 0xd87   : > { %v1848_v6 = vpop.xlane.xlu0 %1847 }
 0xd88   : > { %v1629_v12 = vpack.c.bf16 %v1628_v8, %v1628_v8  ;;  %2958 = vrcp.f32 %v1848_v6 }
 0xd8b   : > { %v1631_v9 = vpop.permute.xlu0 %1630 }
 0xd8c   : > { %v1636_v10 = vsel %vm824_vm5, %v1631_v9, 0 }
 0xd8d   : > { %2787 = vmatpush3.bf16.msra.mxu0 %v1636_v10  ;;  %v2957_v13 = vpop.eup %2956 }
 0xd8e   : > { %2798 = vmatprep.subr.bf16.mxu0 %v2974_v2  ;;  %v1739_v7 = vmul.f32 %v2957_v13, %v2949_v56  ;;  %v2573_v13 = vld [vmem:[%s3501_s9 + $0x1] ss:$0 sm:$0xff] }
 0xd8f   : > { %v1964_v21 = vpop.permute.xlu0 %1963 }
 0xd90   : > { %2789 = vmatmul.mubr.msk.bf16.vlgmr.msra.gmra.mxu0 %vm759_vm4, %v1629_v12  ;;  %v1740_v16 = vpack.c.bf16 %v1739_v7, %v1739_v7  ;;  %v1969_v24 = vsel %vm824_vm5, %v1964_v21, 0 }
 0xd91   : > { %2799 = vmatpush3.bf16.msra.mxu0 %v1747_v14  ;;  %2800 = vmatprep.mubr.msk.bf16.mxu0 %vm2975_vm1, %v2974_v2 }
 0xd92   : > { %2810 = vmatprep.subr.bf16.mxu0 %v2974_v2 }
 0xd95   : > { %v2959_v17 = vpop.eup %2958 }
 0xd96   : > { %v1850_v15 = vmul.f32 %v2959_v17, %v2951_v58  ;;  %v2918_v17 = vld [vmem:[%s3504_s12 + $0x28] sm:$0xff]  }
 0xd98   : > { %2801 = vmatmul.mubr.msk.bf16.vlgmr.msra.gmra.mxu0 %vm759_vm4, %v1740_v16  ;;  %v1851_v23 = vpack.c.bf16 %v1850_v15, %v1850_v15  ;;  %v2579_v15 = vld [vmem:[%s3503_s11 + $0x1] ss:$0 sm:$0xff] }
 0xd99   : > { %2812 = vmatprep.mubr.msk.bf16.mxu0 %vm2975_vm1, %v2974_v2 }
 0xdb4   : > { %v1959_v18 = vpop.xlane.xlu1 %1958 }
 0xdb5   : > { %2960 = vrcp.f32 %v1959_v18  ;;  %v2919_v18 = vld [vmem:[%s3504_s12 + $0x20] sm:$0xff]  }
 0xdb8   : > { %v1853_v19 = vpop.permute.xlu1 %1852 }
 0xdb9   : > { %v1858_v20 = vsel %vm824_vm5, %v1853_v19, 0 }
 0xdba   : > { %2811 = vmatpush3.bf16.msra.mxu0 %v1858_v20 }
 0xdbb   : > { %2822 = vmatprep.subr.bf16.mxu0 %v2974_v2 }
 0xdbd   : > { %2813 = vmatmul.mubr.msk.bf16.vlgmr.msra.gmra.mxu0 %vm759_vm4, %v1851_v23 }
 0xdbe   : > { %2823 = vmatpush3.bf16.msra.mxu0 %v1969_v24  ;;  %2824 = vmatprep.mubr.msk.bf16.mxu0 %vm2975_vm1, %v2974_v2 }
 0xdbf   : > { %2836 = vmatprep.subr.bf16.mxu0 %v2974_v2 }
 0xdc2   : > { %v2961_v25 = vpop.eup %2960 }
 0xdc3   : > { %v1961_v26 = vmul.f32 %v2961_v25, %v2953_v63 }
 0xdc5   : > { %v1962_v27 = vpack.c.bf16 %v1961_v26, %v1961_v26 }
 0xdc7   : > { %2825 = vmatmul.mubr.msk.bf16.vlgmr.msra.gmra.mxu0 %vm759_vm4, %v1962_v27  ;;  %v2592_v27 = vld [vmem:[%s3505_s13 + $0x1] ss:$0 sm:$0xff] }
 0xdc8   : > { %2840 = vmatprep.mubr.msk.bf16.mxu0 %vm2975_vm1, %v2974_v2  ;;  %2837 = vmatpush3.bf16.msra.mxu0 %v2914_v3  ;;  %v2389_v3 = vld [vmem:[#allocation2] sm:$0x1] }
 0xdc9   : > { %2838 = vmatprep.subr.bf16.mxu0 %v2974_v2 }
 0xe50   : > { %v1672_v28 = vpop.f32.mrf.mxu0 }
 0xe52   : > { %v2790_v29 = vpop.f32.mrf.mxu0 }
 0xe54   : > { %v1675_v22 = vpop.f32.mrf.mxu0 }
 0xe56   : > { %v2791_v30 = vpop.f32.mrf.mxu0 }
 0xe58   : > { %v1783_v31 = vpop.f32.mrf.mxu0 }
 0xe59   : > { %2012 = vrot.lane.b32.xlu1 %v1783_v31, %s3539_s2 }
 0xe5a   : > { %v2802_v32 = vpop.f32.mrf.mxu0 }
 0xe5c   : > { %v1786_v33 = vpop.f32.mrf.mxu0 }
 0xe5e   : > { %v2803_v34 = vpop.f32.mrf.mxu0 }
 0xe7d   : > { %v1894_v37 = vpop.f32.mrf.mxu0 }
 0xe7e   : > { %2016 = vrot.lane.b32.xlu0 %v1894_v37, %s3540_s30 }
 0xe7f   : > { %v2814_v38 = vpop.f32.mrf.mxu0 }
 0xe81   : > { %v1897_v39 = vpop.f32.mrf.mxu0 }
 0xe82   : > { %v2920_v39 = vld [vmem:[%s3508_s16 + $0x8] sm:$0xff]  }
 0xe83   : > { %v2815_v40 = vpop.f32.mrf.mxu0 }
 0xe84   : > { %v2921_v40 = vld [vmem:[%s3508_s16] sm:$0xff]  }
 0xe87   : > { %v2005_v41 = vpop.f32.mrf.mxu0 }
 0xe88   : > { %2020 = vrot.lane.b32.xlu1 %v2005_v41, %s3541_s1 }
 0xe89   : > { %v2826_v42 = vpop.f32.mrf.mxu0 }
 0xe8b   : > { %v2008_v43 = vpop.f32.mrf.mxu0 }
 0xe8d   : > { %v2827_v44 = vpop.f32.mrf.mxu0 }
 0xecb   : > { %v2013_v45 = vpop.permute.xlu1 %2012 }
 0xecc   : > { %v2023_v47 = vsel %vm759_vm4, %v1672_v28, %v2013_v45  ;;  %v2600_v45 = vld [vmem:[%s3506_s14 + $0x1] ss:$0 sm:$0xff] }
 0xef0   : > { %v2017_v46 = vpop.permute.xlu0 %2016 }
 0xef1   : > { %v2024_v48 = vsel %vm1214_vm6, %v2023_v47, %v2017_v46  ;;  %v2601_v47 = vld [vmem:[%s3507_s15 + $0x1] ss:$0 sm:$0xff] }
 0xefa   : > { %v2021_v49 = vpop.permute.xlu1 %2020 }
 0xefb   : > { %v2025_v50 = vsel %vm1216_vm7, %v2024_v48, %v2021_v49 }
 0xefc   : > { %v2031_v51 = vpack.c.bf16 %v2025_v50, %v2025_v50 }
 0xefe   : > { %2833 = vmatmul.mubr.msk.bf16.vlgmr.msra.gmra.mxu1 %vm711_vm3, %v2031_v51 }
 0xeff   : > { %2852 = vmatprep.mubr.msk.bf16.mxu1 %vm2975_vm1, %v2974_v2  ;;  %2845 = vmatpush3.bf16.msra.mxu1 %v2916_v4 }
 0xf00   : > { %2846 = vmatprep.subr.bf16.mxu1 %v2974_v2 }
 0xf03   : > { %2847 = vmatpush3.bf16.msra.mxu1 %v2917_v5 }
 0xf04   : > { %2848 = vmatprep.subr.bf16.mxu1 %v2974_v2 }
 0xf07   : > { %2849 = vmatpush3.bf16.msra.mxu1 %v2918_v17 }
 0xf08   : > { %2850 = vmatprep.subr.bf16.mxu1 %v2974_v2 }
 0xf0b   : > { %2851 = vmatpush3.bf16.msra.mxu1 %v2919_v18 }
 0xfbe   : > { %v2089_v53 = vpop.f32.mrf.mxu1 }
 0xfbf   : > { %v2090_v54 = vadd.f32 %v2566_v52, %v2089_v53  ;;  %v2922_v52 = vld [vmem:[%s3510_s18 + $0x18] sm:$0xff]  }
 0xfc0   : > { %v2834_v55 = vpop.f32.mrf.mxu1 }
 0xfc1   : > { %v2099_v56 = vadd.f32 %v2090_v54, %v3302_v0  ;;  %v2915_v0 = vld [vmem:[%s3502_s10 + $0x10] sm:$0xff]   ;;  %v2924_v55 = vld [vmem:[%s3510_s18 + $0x8] sm:$0xff]  }
 0xfc2   : > { %v2092_v57 = vpop.f32.mrf.mxu1  ;;  %2839 = vmatpush3.bf16.msra.mxu0 %v2915_v0  ;;  %v2923_v54 = vld [vmem:[%s3510_s18 + $0x10] sm:$0xff]  }
 0xfc3   : > { %v2100_v58 = vsel %vm711_vm3, %v2099_v56, 0.0  ;;  %2856 = vmatprep.subr.bf16.mxu0 %v2974_v2  ;;  %v2319_v57 = vld [vmem:[%s3509_s17] sm:$0x1] }
 0xfc4   : > { %2101 = vadd.xlane.f32.xlu0 %v2100_v58  ;;  %v2835_v59 = vpop.f32.mrf.mxu1 }
0x104d   : > { %v2102_v60 = vpop.xlane.xlu0 %2101 }
0x104e   : > { %v2103_v61 = vmul.f32 0.03125, %v2102_v60 }
0x1050   : > { %v2104_v62 = vsub.f32 %v2099_v56, %v2103_v61  ;;  %v2925_v56 = vld [vmem:[%s3510_s18] sm:$0xff]  }
0x1052   : > { %v2105_v63 = vmul.f32 %v2104_v62, %v2104_v62 }
0x1054   : > { %v2106_v1 = vsel %vm711_vm3, %v2105_v63, 0.0 }
0x1055   : > { %2107 = vadd.xlane.f32.xlu1 %v2106_v1 }
0x10de   : > { %v2108_v6 = vpop.xlane.xlu1 %2107 }
0x10df   : > { %v2109_v8 = vmul.f32 0.03125, %v2108_v6 }
0x10e1   : > { %v2110_v9 = vadd.f32 1e-05, %v2109_v8 }
0x10e3   : > { %2962 = vrsqrt.f32 %v2110_v9 }
0x10f0   : > { %v2963_v10 = vpop.eup %2962 }
0x10f1   : > { %v2112_v12 = vmul.f32 %v2963_v10, %v2104_v62 }
0x10f3   : > { %v2119_v14 = vmul.f32 %v2572_v11, %v2112_v12 }
0x10f5   : > { %v2126_v7 = vadd.f32 %v2573_v13, %v2119_v14 }
0x10f7   : > { %v2132_v16 = vpack.c.bf16 %v2126_v7, %v2126_v7 }
0x10f9   : > { %2841 = vmatmul.mubr.msk.bf16.vlgmr.msra.gmra.mxu0 %vm711_vm3, %v2132_v16 }
0x10fa   : > { %2860 = vmatprep.mubr.msk.bf16.mxu0 %vm2975_vm1, %v2974_v2  ;;  %2857 = vmatpush3.bf16.msra.mxu0 %v2920_v39 }
0x10fb   : > { %2858 = vmatprep.subr.bf16.mxu0 %v2974_v2 }
0x10fe   : > { %2859 = vmatpush3.bf16.msra.mxu0 %v2921_v40 }
0x10ff   : > { %2864 = vmatprep.subr.bf16.mxu0 %v2974_v2 }
0x11b9   : > { %v2190_v19 = vpop.f32.mrf.mxu0 }
0x11ba   : > { %v2191_v20 = vadd.f32 %v2579_v15, %v2190_v19 }
0x11bb   : > { %v2842_v21 = vpop.f32.mrf.mxu0 }
0x11bc   : > { %v2196_v23 = vmax.f32 %v2191_v20, 0.0 }
0x11bd   : > { %v2193_v24 = vpop.f32.mrf.mxu0 }
0x11be   : > { %v2206_v25 = vpack.c.bf16 %v2196_v23, %v2196_v23 }
0x11bf   : > { %v2843_v26 = vpop.f32.mrf.mxu0 }
0x11c0   : > { %2853 = vmatmul.mubr.msk.bf16.vlgmr.msra.gmra.mxu1 %vm1424_vm8, %v2206_v25 }
0x1280   : > { %v2276_v28 = vpop.f32.mrf.mxu1 }
0x1281   : > { %v2277_v29 = vadd.f32 %v2592_v27, %v2276_v28 }
0x1282   : > { %v2854_v22 = vpop.f32.mrf.mxu1 }
0x1283   : > { %v2286_v30 = vadd.f32 %v2277_v29, %v2126_v7 }
0x1284   : > { %v2279_v31 = vpop.f32.mrf.mxu1 }
0x1285   : > { %v2287_v32 = vsel %vm711_vm3, %v2286_v30, 0.0 }
0x1286   : > { %2288 = vadd.xlane.f32.xlu0 %v2287_v32  ;;  %v2855_v33 = vpop.f32.mrf.mxu1 }
0x130f   : > { %v2289_v34 = vpop.xlane.xlu0 %2288 }
0x1310   : > { %v2290_v35 = vmul.f32 0.03125, %v2289_v34 }
0x1312   : > { %v2291_v36 = vsub.f32 %v2286_v30, %v2290_v35 }
0x1314   : > { %v2292_v37 = vmul.f32 %v2291_v36, %v2291_v36 }
0x1316   : > { %v2293_v38 = vsel %vm711_vm3, %v2292_v37, 0.0 }
0x1317   : > { %2294 = vadd.xlane.f32.xlu0 %v2293_v38 }
0x13a0   : > { %v2295_v41 = vpop.xlane.xlu0 %2294 }
0x13a1   : > { %v2296_v42 = vmul.f32 0.03125, %v2295_v41 }
0x13a3   : > { %v2297_v43 = vadd.f32 1e-05, %v2296_v42 }
0x13a5   : > { %2964 = vrsqrt.f32 %v2297_v43 }
0x13b2   : > { %v2965_v44 = vpop.eup %2964 }
0x13b3   : > { %v2299_v46 = vmul.f32 %v2965_v44, %v2291_v36 }
0x13b5   : > { %v2306_v48 = vmul.f32 %v2600_v45, %v2299_v46 }
0x13b7   : > { %v2313_v49 = vadd.f32 %v2601_v47, %v2306_v48 }
0x13b9   : > { %v2318_v50 = vpack.c.bf16 %v2313_v49, %v2313_v49 }
0x13bb   : > { %v2321_v51 = vshrl.u32 %v2318_v50, 16 }
0x13bd   : > { %v2323_v53 = vrot.slane %v2321_v51, 3 }
0x13bf   : > { %2861 = vmatmul.mubr.msk.bf16.vlgmr.msra.gmra.mxu0 %vm711_vm3, %v2323_v53 }
0x13c0   : > { %2865 = vmatpush3.bf16.msra.mxu0 %v2922_v52  ;;  %2872 = vmatprep.mubr.msk.bf16.mxu0 %vm2975_vm1, %v2974_v2 }
0x13c1   : > { %2866 = vmatprep.subr.bf16.mxu0 %v2974_v2 }
0x13c4   : > { %2867 = vmatpush3.bf16.msra.mxu0 %v2923_v54 }
0x13c5   : > { %2868 = vmatprep.subr.bf16.mxu0 %v2974_v2 }
0x13c8   : > { %2869 = vmatpush3.bf16.msra.mxu0 %v2924_v55 }
0x13c9   : > { %2870 = vmatprep.subr.bf16.mxu0 %v2974_v2 }
0x13cc   : > { %2871 = vmatpush3.bf16.msra.mxu0 %v2925_v56 }
0x147f   : > { %v2373_v58 = vpop.f32.mrf.mxu0 }
0x1480   : > { %v2374_v59 = vadd.f32 %v2373_v58, %v2319_v57 }
0x1481   : > { %v2862_v60 = vpop.f32.mrf.mxu0 }
0x1482   : > { %v2379_v61 = vmax.f32 %v2374_v59, 0.0 }
0x1483   : > { %v2376_v62 = vpop.f32.mrf.mxu0 }
0x1484   : > { %v2388_v63 = vpack.c.bf16 %v2379_v61, %v2379_v61 }
0x1485   : > { %v2863_v1 = vpop.f32.mrf.mxu0 }
0x1486   : > { %2873 = vmatmul.mubr.msk.bf16.vlgmr.msra.gmra.mxu0 %vm1424_vm8, %v2388_v63 }
0x1546   : > { %v2451_v2 = vpop.f32.mrf.mxu0 }
0x1547   : > { %v2452_v0 = vadd.f32 %v2451_v2, %v2389_v3 }
0x1548   : > { %v2874_v4 = vpop.f32.mrf.mxu0 }
0x1549   : > { %2458 = vst.msk [vmem:[%s624_s29] sm:$0x1] %vm2457_vm9, %v2452_v0 }
0x154a   : > { %v2454_v5 = vpop.f32.mrf.mxu0 }
0x154c   : > { %v2875_v6 = vpop.f32.mrf.mxu0 }
0x154d PF: > { %s32_s23 = sadd.s32 1, %s2972_s23  }
0x154e   : > { %p29_p4 = scmp.ge.s32.totalorder %s32_s23, 4  }
0x1550   :  { %31 = sbr.rel (!%p29_p4) target bundleno = 6 (0x6), region = 142 }

</bundles_post_ra>
